<compile_context>
chip_gen: v5e
topology: v5e:2x2
jax: 0.10.0
libtpu: 0.0.40
codegen_flags: <defaults>
</compile_context>

<pallas_src>
import math
from functools import partial

import jax
import jax.numpy as jnp
from jax.experimental import pallas as pl
from jax.experimental.pallas import tpu as pltpu


# ----------------------------------------------------------------------------
# Tile selection helpers
# ----------------------------------------------------------------------------

def _pick_tile(dim, cap, align=128):
    """Largest multiple of `align` <= cap that divides `dim`; falls back to the
    full dim (a full-extent block is always layout-legal)."""
    if dim <= cap:
        return dim
    t = (cap // align) * align
    while t >= align:
        if dim % t == 0:
            return t
        t -= align
    return dim  # TODO(synk): non-power-of-two spatial dims fall back to a full block.


def _pick_proj_tile(hw, width, cap=1024):
    """Spatial tile for the fused projection + pool kernel.

    The tile must hold whole 2x2 pooling row pairs (T % (2*width) == 0) and,
    unless it is the full extent, keep the pooled output block lane-aligned
    (T % 512 == 0 so that T/4 is a multiple of 128)."""
    if hw <= cap:
        return hw
    quantum = 512
    while quantum % (2 * width) != 0:
        quantum += 512
    t = (cap // quantum) * quantum
    while t >= quantum:
        if hw % t == 0:
            return t
        t -= quantum
    return hw


def _pool_select_matrix(t, width):
    """One-hot (T, T/4) bf16 matrix selecting, in row-major pooled order, the
    flattened (even row, even col) position of every 2x2 pooling window."""
    w2 = width // 2
    j = jnp.arange(t // 4)
    src = 2 * (j // w2) * width + 2 * (j % w2)
    return (jnp.arange(t)[:, None] == src[None, :]).astype(jnp.bfloat16)


# ----------------------------------------------------------------------------
# Kernel 1: fused theta / phi / g 1x1 projections + 2x2 max-pool of phi / g
# ----------------------------------------------------------------------------

def _proj_pool_kernel(x_ref, w_ref, sel_ref, theta_ref, phi_ref, g_ref, *,
                      c8, width):
    x = x_ref[...].astype(jnp.bfloat16)                      # (C, T)
    # One fused MXU matmul for all three 1x1 convs: (C/8+C/8+C/2, C) @ (C, T).
    proj = jax.lax.dot_general(w_ref[...], x, (((1,), (0,)), ((), ())),
                               preferred_element_type=jnp.float32)   # (CO, T)
    theta_ref[...] = proj[:c8].astype(theta_ref.dtype)

    # Fused 2x2 max-pool of the phi/g rows.  Flattened spatial layout: column
    # t = row * width + col.  shift(v, k)[:, t] == v[:, (t + k) % T]; the
    # wrapped positions are never selected by the one-hot matrix below.
    pg = proj[c8:]                                           # (C/8 + C/2, T) f32

    def shift(v, k):
        return jnp.concatenate([v[:, k:], v[:, :k]], axis=-1)

    pooled2 = jnp.maximum(pg, shift(pg, width))              # vertical pair max
    pooled4 = jnp.maximum(pooled2, shift(pooled2, 1))        # + horizontal pair max
    # One-hot selection matmul keeps only the (even row, even col) lanes and
    # compacts them to T/4 (exact: rounding-then-max == max-then-rounding).
    pooled = jax.lax.dot_general(pooled4.astype(jnp.bfloat16), sel_ref[...],
                                 (((1,), (0,)), ((), ())),
                                 preferred_element_type=jnp.float32)  # (.., T/4)
    phi_ref[...] = pooled[:c8].astype(phi_ref.dtype)
    g_ref[...] = pooled[c8:].astype(g_ref.dtype)


def project_pool_qkv(x_flat, w_theta, w_phi, w_g, width):
    N, C, HW = x_flat.shape
    C8, C2 = w_theta.shape[0], w_g.shape[0]
    CO = C8 + C8 + C2
    HW4 = HW // 4
    w_all = jnp.concatenate([w_theta, w_phi, w_g], axis=0).astype(jnp.bfloat16)
    T = _pick_proj_tile(HW, width)
    sel = _pool_select_matrix(T, width)
    grid = (N, HW // T)
    flops = 2 * N * HW * C * CO + 2 * N * (C8 + C2) * HW * (T // 4)
    bytes_acc = (4 * N * C * HW + 2 * CO * C + 2 * T * (T // 4)
                 + 2 * N * (C8 * HW + (C8 + C2) * HW4))
    return pl.pallas_call(
        partial(_proj_pool_kernel, c8=C8, width=width),
        out_shape=(jax.ShapeDtypeStruct((N, C8, HW), jnp.bfloat16),
                   jax.ShapeDtypeStruct((N, C8, HW4), jnp.bfloat16),
                   jax.ShapeDtypeStruct((N, C2, HW4), jnp.bfloat16)),
        grid=grid,
        in_specs=[pl.BlockSpec((None, C, T), lambda b, i: (b, 0, i)),
                  pl.BlockSpec((CO, C), lambda b, i: (0, 0)),
                  pl.BlockSpec((T, T // 4), lambda b, i: (0, 0))],
        out_specs=(pl.BlockSpec((None, C8, T), lambda b, i: (b, 0, i)),
                   pl.BlockSpec((None, C8, T // 4), lambda b, i: (b, 0, i)),
                   pl.BlockSpec((None, C2, T // 4), lambda b, i: (b, 0, i))),
        compiler_params=pltpu.CompilerParams(
            dimension_semantics=("parallel", "parallel"),
            vmem_limit_bytes=32 * 1024 * 1024),
        cost_estimate=pl.CostEstimate(flops=flops, transcendentals=0,
                                      bytes_accessed=bytes_acc),
    )(x_flat, w_all, sel)


# ----------------------------------------------------------------------------
# Kernel 2: attention core (single k-tile) with fused output conv + residual
# ----------------------------------------------------------------------------

def _attn_kernel(theta_ref, phi_ref, g_ref, x_ref, wo_ref, out_ref):
    # Scores, transposed: s_T[k, q] = sum_c phi[c, k] * theta[c, q].
    # phi (C/8, K) is the smallest operand, so any internal relayout is tiny;
    # the two large matmuls below are canonical (M,K)x(K,N).
    s = jax.lax.dot_general(phi_ref[...], theta_ref[...],
                            (((0,), (0,)), ((), ())),
                            preferred_element_type=jnp.float32)        # (K, Tq)
    m = jnp.max(s, axis=0, keepdims=True)                              # (1, Tq)
    p = jnp.exp(s - m)                                                 # (K, Tq)
    l = jnp.sum(p, axis=0, keepdims=True)                              # (1, Tq)
    # o_half[c2, q] = sum_k g[c2, k] * p[k, q]
    acc = jax.lax.dot_general(g_ref[...], p.astype(jnp.bfloat16),
                              (((1,), (0,)), ((), ())),
                              preferred_element_type=jnp.float32)      # (C/2, Tq)
    acc = acc * pl.reciprocal(l, approx=False)                         # softmax denom
    # Fused output 1x1 conv (gamma pre-folded into W_o) + residual add.
    o = jax.lax.dot_general(wo_ref[...], acc.astype(jnp.bfloat16),
                            (((1,), (0,)), ((), ())),
                            preferred_element_type=jnp.float32)        # (C, Tq)
    out_ref[...] = o + x_ref[...]


def attention_core(theta, phi, g, x_flat, w_o_gamma):
    N, C8, HW = theta.shape
    HW4 = phi.shape[2]
    C2 = g.shape[1]
    C = x_flat.shape[1]
    Tq = _pick_tile(HW, 128)
    grid = (N, HW // Tq)
    flops = 2 * N * (HW * HW4 * C8 + HW * HW4 * C2 + HW * C * C2)
    bytes_acc = (2 * N * (C8 * HW + C8 * HW4 + C2 * HW4)    # bf16 theta/phi/g
                 + 2 * 4 * N * C * HW                       # f32 x read + out write
                 + 2 * C * C2)                              # bf16 gamma*W_o
    return pl.pallas_call(
        _attn_kernel,
        out_shape=jax.ShapeDtypeStruct((N, C, HW), jnp.float32),
        grid=grid,
        in_specs=[
            pl.BlockSpec((None, C8, Tq), lambda b, qi: (b, 0, qi)),   # theta
            pl.BlockSpec((None, C8, HW4), lambda b, qi: (b, 0, 0)),   # phi (resident)
            pl.BlockSpec((None, C2, HW4), lambda b, qi: (b, 0, 0)),   # g   (resident)
            pl.BlockSpec((None, C, Tq), lambda b, qi: (b, 0, qi)),    # x residual
            pl.BlockSpec((C, C2), lambda b, qi: (0, 0)),              # gamma * W_o
        ],
        out_specs=pl.BlockSpec((None, C, Tq), lambda b, qi: (b, 0, qi)),
        compiler_params=pltpu.CompilerParams(
            dimension_semantics=("parallel", "parallel"),
            vmem_limit_bytes=32 * 1024 * 1024),
        cost_estimate=pl.CostEstimate(flops=flops, transcendentals=N * HW * HW4,
                                      bytes_accessed=bytes_acc),
    )(theta, phi, g, x_flat, w_o_gamma)


# ----------------------------------------------------------------------------
# Plain-JAX glue + forward pass
# ----------------------------------------------------------------------------

def max_pool2(x):
    N, C, H, W = x.shape
    return x.reshape(N, C, H // 2, 2, W // 2, 2).max(axis=(3, 5))


def _project_pool_xla(x_flat, w_theta, w_phi, w_g, height, width):
    """Plain-XLA safety net for the fused Pallas projection (same math/dtypes)."""
    N, C, HW = x_flat.shape
    xb = x_flat.astype(jnp.bfloat16)

    def proj(w):
        return jnp.einsum('oc,ncs->nos', w.astype(jnp.bfloat16), xb,
                          preferred_element_type=jnp.float32).astype(jnp.bfloat16)

    theta = proj(w_theta)
    phi = max_pool2(proj(w_phi).reshape(N, -1, height, width)).reshape(N, -1, HW // 4)
    g = max_pool2(proj(w_g).reshape(N, -1, height, width)).reshape(N, -1, HW // 4)
    return theta, phi, g


def attention_forward(params, x, fuse_pool=True):
    N, C, H, W = x.shape
    assert C % 8 == 0 and H % 2 == 0 and W % 2 == 0
    HW = H * W
    x_flat = x.reshape(N, C, HW)
    if fuse_pool:
        theta, phi, g = project_pool_qkv(x_flat, params['theta'], params['phi'],
                                         params['g'], W)
    else:
        theta, phi, g = _project_pool_xla(x_flat, params['theta'], params['phi'],
                                          params['g'], H, W)
    # gamma folded into the output conv: gamma * (W_o @ o) == (gamma * W_o) @ o.
    w_o_gamma = (params['gamma'] * params['o']).astype(jnp.bfloat16)
    out_flat = attention_core(theta, phi, g, x_flat, w_o_gamma)
    return out_flat.reshape(N, C, H, W)


# ----------------------------------------------------------------------------
# Deterministic synthetic parameters (spectral norm folded into init)
# ----------------------------------------------------------------------------

def spectral_normalize(w, key, n_iter=5, eps=1e-12):
    # nn.utils.spectral_norm: W / sigma_max(W.view(O, -1)); the power iteration
    # is folded into parameter setup since the weights are constants here.
    u = jax.random.normal(key, (w.shape[0],), jnp.float32)
    u = u / (jnp.linalg.norm(u) + eps)
    v = None
    for _ in range(n_iter):
        v = w.T @ u
        v = v / (jnp.linalg.norm(v) + eps)
        u = w @ v
        u = u / (jnp.linalg.norm(u) + eps)
    sigma = u @ (w @ v)
    return w / sigma


def init_params(key, ch):
    def conv_w(k, o, c):
        kw, ku = jax.random.split(k)
        w = jax.random.normal(kw, (o, c), jnp.float32) / math.sqrt(c)
        return spectral_normalize(w, ku)

    k1, k2, k3, k4 = jax.random.split(key, 4)
    return {
        'theta': conv_w(k1, ch // 8, ch),
        'phi': conv_w(k2, ch // 8, ch),
        'g': conv_w(k3, ch // 2, ch),
        'o': conv_w(k4, ch, ch // 2),
        # PyTorch initializes gamma to 0.0 (output == x exactly).  Use a
        # nonzero value so the attention path contributes to the test output.
        'gamma': jnp.asarray(0.5, jnp.float32),
    }


def attention_ref(params, x):
    """Pure-JAX reference with the same bf16-input / f32-accumulate precision."""
    N, C, H, W = x.shape
    C8, C2 = C // 8, C // 2
    HW = H * W
    xb = x.reshape(N, C, HW).astype(jnp.bfloat16)
    wt = params['theta'].astype(jnp.bfloat16)
    wp = params['phi'].astype(jnp.bfloat16)
    wg = params['g'].astype(jnp.bfloat16)
    wo = params['o'].astype(jnp.bfloat16)
    theta = jnp.einsum('oc,ncs->nos', wt, xb,
                       preferred_element_type=jnp.float32).astype(jnp.bfloat16)
    phi = jnp.einsum('oc,ncs->nos', wp, xb,
                     preferred_element_type=jnp.float32).astype(jnp.bfloat16)
    g = jnp.einsum('oc,ncs->nos', wg, xb,
                   preferred_element_type=jnp.float32).astype(jnp.bfloat16)
    phi = max_pool2(phi.reshape(N, C8, H, W)).reshape(N, C8, HW // 4)
    g = max_pool2(g.reshape(N, C2, H, W)).reshape(N, C2, HW // 4)
    s = jnp.einsum('nct,ncs->nts', theta, phi,
                   preferred_element_type=jnp.float32)                # (N, HW, HW/4)
    beta = jax.nn.softmax(s, axis=-1)
    o_half = jnp.einsum('nts,ncs->ntc', beta.astype(jnp.bfloat16), g,
                        preferred_element_type=jnp.float32)           # (N, HW, C/2)
    o = jnp.einsum('oc,ntc->not', wo, o_half.astype(jnp.bfloat16),
                   preferred_element_type=jnp.float32)                # (N, C, HW)
    out = params['gamma'] * o + x.reshape(N, C, HW)
    return out.reshape(N, C, H, W)


if __name__ == "__main__":
    key = jax.random.PRNGKey(0)
    kx, kp = jax.random.split(key)
    N, ch, H, W = 2, 128, 16, 16
    x = jax.random.normal(kx, (N, ch, H, W), jnp.float32)
    params = init_params(kp, ch)

    try:
        fwd = jax.jit(partial(attention_forward, fuse_pool=True))
        out = jax.block_until_ready(fwd(params, x))
    except Exception:
        # Safety net: if the fused-pool projection fails to lower on this
        # toolchain, fall back to an XLA projection; the attention core
        # (the hot kernel) is still the Pallas kernel above.
        fwd = jax.jit(partial(attention_forward, fuse_pool=False))
        out = jax.block_until_ready(fwd(params, x))

    assert out.shape == (N, ch, H, W), out.shape
    assert bool(jnp.all(jnp.isfinite(out)))

    ref = attention_ref(params, x)
    err = float(jnp.max(jnp.abs(out - ref)))
    assert err < 5e-2, f"max abs err vs reference: {err}"
    print("KERNEL_OK")
</pallas_src>

<mosaic_0001>
module attributes {stable_mosaic.version = 11 : i64} {
  func.func @_proj_pool_kernel(%arg0: i32, %arg1: i32, %arg2: memref<1x128x256xf32, #tpu.memory_space<vmem>>, %arg3: memref<96x128xbf16, #tpu.memory_space<vmem>>, %arg4: memref<256x64xbf16, #tpu.memory_space<vmem>>, %arg5: memref<1x16x256xbf16, #tpu.memory_space<vmem>>, %arg6: memref<1x16x64xbf16, #tpu.memory_space<vmem>>, %arg7: memref<1x64x64xbf16, #tpu.memory_space<vmem>>) attributes {dimension_semantics = [#tpu.dimension_semantics<parallel>, #tpu.dimension_semantics<parallel>], iteration_bounds = array<i64: 2, 1>, scalar_prefetch = 0 : i64, scratch_operands = 0 : i64, tpu.core_type = #tpu.core_type<tc>, window_params = [{transform_indices = @transform_0, window_bounds = array<i64: 1, 128, 256>}, {pipeline_mode = #tpu.pipeline_mode<synchronous>, transform_indices = @transform_1, window_bounds = array<i64: 96, 128>}, {pipeline_mode = #tpu.pipeline_mode<synchronous>, transform_indices = @transform_2, window_bounds = array<i64: 256, 64>}, {transform_indices = @transform_3, window_bounds = array<i64: 1, 16, 256>}, {transform_indices = @transform_4, window_bounds = array<i64: 1, 16, 64>}, {transform_indices = @transform_5, window_bounds = array<i64: 1, 64, 64>}]} {
    %c0 = arith.constant 0 : index
    %c0_0 = arith.constant 0 : index
    %c0_1 = arith.constant 0 : index
    %0 = vector.load %arg2[%c0, %c0_0, %c0_1] : memref<1x128x256xf32, #tpu.memory_space<vmem>>, vector<1x128x256xf32>
    %1 = vector.shape_cast %0 : vector<1x128x256xf32> to vector<128x256xf32>
    %2 = arith.truncf %1 : vector<128x256xf32> to vector<128x256xbf16>
    %c0_2 = arith.constant 0 : index
    %c0_3 = arith.constant 0 : index
    %3 = vector.load %arg3[%c0_2, %c0_3] : memref<96x128xbf16, #tpu.memory_space<vmem>>, vector<96x128xbf16>
    %cst = arith.constant dense<0.000000e+00> : vector<96x256xf32>
    %4 = tpu.matmul %3, %2, %cst {dimension_numbers = #tpu.dot_dimension_numbers<[1], [0], [0], [1], [0, 0, 1, 1], [], []>} : vector<96x128xbf16>, vector<128x256xbf16>, vector<96x256xf32> -> vector<96x256xf32>
    %5 = vector.extract_strided_slice %4 {offsets = [0, 0], sizes = [16, 256], strides = [1, 1]} : vector<96x256xf32> to vector<16x256xf32>
    %6 = arith.truncf %5 : vector<16x256xf32> to vector<16x256xbf16>
    %c0_4 = arith.constant 0 : index
    %c0_5 = arith.constant 0 : index
    %c0_6 = arith.constant 0 : index
    %7 = vector.load %arg5[%c0_4, %c0_5, %c0_6] : memref<1x16x256xbf16, #tpu.memory_space<vmem>>, vector<1x16x256xbf16>
    %8 = vector.shape_cast %7 : vector<1x16x256xbf16> to vector<16x256xbf16>
    %9 = vector.shape_cast %6 : vector<16x256xbf16> to vector<1x16x256xbf16>
    tpu.vector_store %arg5[%c0_4, %c0_5, %c0_6], %9 {strides = array<i32>} : memref<1x16x256xbf16, #tpu.memory_space<vmem>>, vector<1x16x256xbf16>,
    %10 = vector.extract_strided_slice %4 {offsets = [16, 0], sizes = [80, 256], strides = [1, 1]} : vector<96x256xf32> to vector<80x256xf32>
    %11 = vector.extract_strided_slice %10 {offsets = [0, 16], sizes = [80, 240], strides = [1, 1]} : vector<80x256xf32> to vector<80x240xf32>
    %12 = vector.extract_strided_slice %10 {offsets = [0, 0], sizes = [80, 16], strides = [1, 1]} : vector<80x256xf32> to vector<80x16xf32>
    %13 = tpu.concatenate %11, %12 in 1 : vector<80x240xf32>, vector<80x16xf32> -> vector<80x256xf32>
    %14 = arith.maximumf %10, %13 : vector<80x256xf32>
    %15 = vector.extract_strided_slice %14 {offsets = [0, 1], sizes = [80, 255], strides = [1, 1]} : vector<80x256xf32> to vector<80x255xf32>
    %16 = vector.extract_strided_slice %14 {offsets = [0, 0], sizes = [80, 1], strides = [1, 1]} : vector<80x256xf32> to vector<80x1xf32>
    %17 = tpu.concatenate %15, %16 in 1 : vector<80x255xf32>, vector<80x1xf32> -> vector<80x256xf32>
    %18 = arith.maximumf %14, %17 : vector<80x256xf32>
    %19 = arith.truncf %18 : vector<80x256xf32> to vector<80x256xbf16>
    %c0_7 = arith.constant 0 : index
    %c0_8 = arith.constant 0 : index
    %20 = vector.load %arg4[%c0_7, %c0_8] : memref<256x64xbf16, #tpu.memory_space<vmem>>, vector<256x64xbf16>
    %cst_9 = arith.constant dense<0.000000e+00> : vector<80x64xf32>
    %21 = tpu.matmul %19, %20, %cst_9 {dimension_numbers = #tpu.dot_dimension_numbers<[1], [0], [0], [1], [0, 0, 1, 1], [], []>} : vector<80x256xbf16>, vector<256x64xbf16>, vector<80x64xf32> -> vector<80x64xf32>
    %22 = vector.extract_strided_slice %21 {offsets = [0, 0], sizes = [16, 64], strides = [1, 1]} : vector<80x64xf32> to vector<16x64xf32>
    %23 = arith.truncf %22 : vector<16x64xf32> to vector<16x64xbf16>
    %c0_10 = arith.constant 0 : index
    %c0_11 = arith.constant 0 : index
    %c0_12 = arith.constant 0 : index
    %24 = vector.load %arg6[%c0_10, %c0_11, %c0_12] : memref<1x16x64xbf16, #tpu.memory_space<vmem>>, vector<1x16x64xbf16>
    %25 = vector.shape_cast %24 : vector<1x16x64xbf16> to vector<16x64xbf16>
    %26 = vector.shape_cast %23 : vector<16x64xbf16> to vector<1x16x64xbf16>
    tpu.vector_store %arg6[%c0_10, %c0_11, %c0_12], %26 {strides = array<i32>} : memref<1x16x64xbf16, #tpu.memory_space<vmem>>, vector<1x16x64xbf16>,
    %27 = vector.extract_strided_slice %21 {offsets = [16, 0], sizes = [64, 64], strides = [1, 1]} : vector<80x64xf32> to vector<64x64xf32>
    %28 = arith.truncf %27 : vector<64x64xf32> to vector<64x64xbf16>
    %c0_13 = arith.constant 0 : index
    %c0_14 = arith.constant 0 : index
    %c0_15 = arith.constant 0 : index
    %29 = vector.load %arg7[%c0_13, %c0_14, %c0_15] : memref<1x64x64xbf16, #tpu.memory_space<vmem>>, vector<1x64x64xbf16>
    %30 = vector.shape_cast %29 : vector<1x64x64xbf16> to vector<64x64xbf16>
    %31 = vector.shape_cast %28 : vector<64x64xbf16> to vector<1x64x64xbf16>
    tpu.vector_store %arg7[%c0_13, %c0_14, %c0_15], %31 {strides = array<i32>} : memref<1x64x64xbf16, #tpu.memory_space<vmem>>, vector<1x64x64xbf16>,
    return
  }
  func.func @transform_0(%arg0: i32, %arg1: i32) -> (i32, i32, i32) {
    %c0_i32 = arith.constant 0 : i32
    %c0_i32_0 = arith.constant 0 : i32
    return %arg0, %c0_i32, %arg1 : i32, i32, i32
  }
  func.func @transform_1(%arg0: i32, %arg1: i32) -> (i32, i32) {
    %c0_i32 = arith.constant 0 : i32
    %c0_i32_0 = arith.constant 0 : i32
    %c0_i32_1 = arith.constant 0 : i32
    return %c0_i32, %c0_i32_0 : i32, i32
  }
  func.func @transform_2(%arg0: i32, %arg1: i32) -> (i32, i32) {
    %c0_i32 = arith.constant 0 : i32
    %c0_i32_0 = arith.constant 0 : i32
    %c0_i32_1 = arith.constant 0 : i32
    return %c0_i32, %c0_i32_0 : i32, i32
  }
  func.func @transform_3(%arg0: i32, %arg1: i32) -> (i32, i32, i32) {
    %c0_i32 = arith.constant 0 : i32
    %c0_i32_0 = arith.constant 0 : i32
    return %arg0, %c0_i32, %arg1 : i32, i32, i32
  }
  func.func @transform_4(%arg0: i32, %arg1: i32) -> (i32, i32, i32) {
    %c0_i32 = arith.constant 0 : i32
    %c0_i32_0 = arith.constant 0 : i32
    return %arg0, %c0_i32, %arg1 : i32, i32, i32
  }
  func.func @transform_5(%arg0: i32, %arg1: i32) -> (i32, i32, i32) {
    %c0_i32 = arith.constant 0 : i32
    %c0_i32_0 = arith.constant 0 : i32
    return %arg0, %c0_i32, %arg1 : i32, i32, i32
  }
}

module attributes {stable_mosaic.version = 11 : i64} {
  func.func @_attn_kernel(%arg0: i32, %arg1: i32, %arg2: memref<1x16x128xbf16, #tpu.memory_space<vmem>>, %arg3: memref<1x16x64xbf16, #tpu.memory_space<vmem>>, %arg4: memref<1x64x64xbf16, #tpu.memory_space<vmem>>, %arg5: memref<1x128x128xf32, #tpu.memory_space<vmem>>, %arg6: memref<128x64xbf16, #tpu.memory_space<vmem>>, %arg7: memref<1x128x128xf32, #tpu.memory_space<vmem>>) attributes {dimension_semantics = [#tpu.dimension_semantics<parallel>, #tpu.dimension_semantics<parallel>], iteration_bounds = array<i64: 2, 2>, scalar_prefetch = 0 : i64, scratch_operands = 0 : i64, tpu.core_type = #tpu.core_type<tc>, window_params = [{transform_indices = @transform_0, window_bounds = array<i64: 1, 16, 128>}, {transform_indices = @transform_1, window_bounds = array<i64: 1, 16, 64>}, {transform_indices = @transform_2, window_bounds = array<i64: 1, 64, 64>}, {transform_indices = @transform_3, window_bounds = array<i64: 1, 128, 128>}, {pipeline_mode = #tpu.pipeline_mode<synchronous>, transform_indices = @transform_4, window_bounds = array<i64: 128, 64>}, {transform_indices = @transform_5, window_bounds = array<i64: 1, 128, 128>}]} {
    %c0 = arith.constant 0 : index
    %c0_0 = arith.constant 0 : index
    %c0_1 = arith.constant 0 : index
    %0 = vector.load %arg3[%c0, %c0_0, %c0_1] : memref<1x16x64xbf16, #tpu.memory_space<vmem>>, vector<1x16x64xbf16>
    %1 = vector.shape_cast %0 : vector<1x16x64xbf16> to vector<16x64xbf16>
    %c0_2 = arith.constant 0 : index
    %c0_3 = arith.constant 0 : index
    %c0_4 = arith.constant 0 : index
    %2 = vector.load %arg2[%c0_2, %c0_3, %c0_4] : memref<1x16x128xbf16, #tpu.memory_space<vmem>>, vector<1x16x128xbf16>
    %3 = vector.shape_cast %2 : vector<1x16x128xbf16> to vector<16x128xbf16>
    %cst = arith.constant dense<0.000000e+00> : vector<64x128xf32>
    %4 = tpu.matmul %1, %3, %cst {dimension_numbers = #tpu.dot_dimension_numbers<[0], [0], [1], [1], [0, 1, 1, 1], [], []>} : vector<16x64xbf16>, vector<16x128xbf16>, vector<64x128xf32> -> vector<64x128xf32>
    %cst_5 = arith.constant dense<0xFF800000> : vector<128xf32>
    %5 = vector.multi_reduction <maximumf>, %4, %cst_5 [0] : vector<64x128xf32> to vector<128xf32>
    %6 = vector.shape_cast %5 : vector<128xf32> to vector<1x128xf32>
    %7 = vector.broadcast %6 : vector<1x128xf32> to vector<64x128xf32>
    %8 = arith.subf %4, %7 : vector<64x128xf32>
    %9 = math.exp %8 : vector<64x128xf32>
    %cst_6 = arith.constant dense<0.000000e+00> : vector<128xf32>
    %10 = vector.multi_reduction <add>, %9, %cst_6 [0] : vector<64x128xf32> to vector<128xf32>
    %11 = vector.shape_cast %10 : vector<128xf32> to vector<1x128xf32>
    %c0_7 = arith.constant 0 : index
    %c0_8 = arith.constant 0 : index
    %c0_9 = arith.constant 0 : index
    %12 = vector.load %arg4[%c0_7, %c0_8, %c0_9] : memref<1x64x64xbf16, #tpu.memory_space<vmem>>, vector<1x64x64xbf16>
    %13 = vector.shape_cast %12 : vector<1x64x64xbf16> to vector<64x64xbf16>
    %14 = arith.truncf %9 : vector<64x128xf32> to vector<64x128xbf16>
    %cst_10 = arith.constant dense<0.000000e+00> : vector<64x128xf32>
    %15 = tpu.matmul %13, %14, %cst_10 {dimension_numbers = #tpu.dot_dimension_numbers<[1], [0], [0], [1], [0, 0, 1, 1], [], []>} : vector<64x64xbf16>, vector<64x128xbf16>, vector<64x128xf32> -> vector<64x128xf32>
    %16 = tpu.reciprocal %11 : vector<1x128xf32> -> vector<1x128xf32>
    %17 = vector.broadcast %16 : vector<1x128xf32> to vector<64x128xf32>
    %18 = arith.mulf %15, %17 : vector<64x128xf32>
    %c0_11 = arith.constant 0 : index
    %c0_12 = arith.constant 0 : index
    %19 = vector.load %arg6[%c0_11, %c0_12] : memref<128x64xbf16, #tpu.memory_space<vmem>>, vector<128x64xbf16>
    %20 = arith.truncf %18 : vector<64x128xf32> to vector<64x128xbf16>
    %cst_13 = arith.constant dense<0.000000e+00> : vector<128x128xf32>
    %21 = tpu.matmul %19, %20, %cst_13 {dimension_numbers = #tpu.dot_dimension_numbers<[1], [0], [0], [1], [0, 0, 1, 1], [], []>} : vector<128x64xbf16>, vector<64x128xbf16>, vector<128x128xf32> -> vector<128x128xf32>
    %c0_14 = arith.constant 0 : index
    %c0_15 = arith.constant 0 : index
    %c0_16 = arith.constant 0 : index
    %22 = vector.load %arg5[%c0_14, %c0_15, %c0_16] : memref<1x128x128xf32, #tpu.memory_space<vmem>>, vector<1x128x128xf32>
    %23 = vector.shape_cast %22 : vector<1x128x128xf32> to vector<128x128xf32>
    %24 = arith.addf %21, %23 : vector<128x128xf32>
    %c0_17 = arith.constant 0 : index
    %c0_18 = arith.constant 0 : index
    %c0_19 = arith.constant 0 : index
    %25 = vector.load %arg7[%c0_17, %c0_18, %c0_19] : memref<1x128x128xf32, #tpu.memory_space<vmem>>, vector<1x128x128xf32>
    %26 = vector.shape_cast %25 : vector<1x128x128xf32> to vector<128x128xf32>
    %27 = vector.shape_cast %24 : vector<128x128xf32> to vector<1x128x128xf32>
    tpu.vector_store %arg7[%c0_17, %c0_18, %c0_19], %27 {strides = array<i32>} : memref<1x128x128xf32, #tpu.memory_space<vmem>>, vector<1x128x128xf32>,
    return
  }
  func.func @transform_0(%arg0: i32, %arg1: i32) -> (i32, i32, i32) {
    %c0_i32 = arith.constant 0 : i32
    %c0_i32_0 = arith.constant 0 : i32
    return %arg0, %c0_i32, %arg1 : i32, i32, i32
  }
  func.func @transform_1(%arg0: i32, %arg1: i32) -> (i32, i32, i32) {
    %c0_i32 = arith.constant 0 : i32
    %c0_i32_0 = arith.constant 0 : i32
    %c0_i32_1 = arith.constant 0 : i32
    return %arg0, %c0_i32, %c0_i32_0 : i32, i32, i32
  }
  func.func @transform_2(%arg0: i32, %arg1: i32) -> (i32, i32, i32) {
    %c0_i32 = arith.constant 0 : i32
    %c0_i32_0 = arith.constant 0 : i32
    %c0_i32_1 = arith.constant 0 : i32
    return %arg0, %c0_i32, %c0_i32_0 : i32, i32, i32
  }
  func.func @transform_3(%arg0: i32, %arg1: i32) -> (i32, i32, i32) {
    %c0_i32 = arith.constant 0 : i32
    %c0_i32_0 = arith.constant 0 : i32
    return %arg0, %c0_i32, %arg1 : i32, i32, i32
  }
  func.func @transform_4(%arg0: i32, %arg1: i32) -> (i32, i32) {
    %c0_i32 = arith.constant 0 : i32
    %c0_i32_0 = arith.constant 0 : i32
    %c0_i32_1 = arith.constant 0 : i32
    return %c0_i32, %c0_i32_0 : i32, i32
  }
  func.func @transform_5(%arg0: i32, %arg1: i32) -> (i32, i32, i32) {
    %c0_i32 = arith.constant 0 : i32
    %c0_i32_0 = arith.constant 0 : i32
    return %arg0, %c0_i32, %arg1 : i32, i32, i32
  }
}

module attributes {stable_mosaic.version = 11 : i64} {
  func.func @_attn_kernel(%arg0: i32, %arg1: i32, %arg2: memref<1x16x128xbf16, #tpu.memory_space<vmem>>, %arg3: memref<1x16x64xbf16, #tpu.memory_space<vmem>>, %arg4: memref<1x64x64xbf16, #tpu.memory_space<vmem>>, %arg5: memref<1x128x128xf32, #tpu.memory_space<vmem>>, %arg6: memref<128x64xbf16, #tpu.memory_space<vmem>>, %arg7: memref<1x128x128xf32, #tpu.memory_space<vmem>>) attributes {dimension_semantics = [#tpu.dimension_semantics<parallel>, #tpu.dimension_semantics<parallel>], iteration_bounds = array<i64: 2, 2>, scalar_prefetch = 0 : i64, scratch_operands = 0 : i64, tpu.core_type = #tpu.core_type<tc>, window_params = [{transform_indices = @transform_0, window_bounds = array<i64: 1, 16, 128>}, {transform_indices = @transform_1, window_bounds = array<i64: 1, 16, 64>}, {transform_indices = @transform_2, window_bounds = array<i64: 1, 64, 64>}, {transform_indices = @transform_3, window_bounds = array<i64: 1, 128, 128>}, {pipeline_mode = #tpu.pipeline_mode<synchronous>, transform_indices = @transform_4, window_bounds = array<i64: 128, 64>}, {transform_indices = @transform_5, window_bounds = array<i64: 1, 128, 128>}]} {
    %c0 = arith.constant 0 : index
    %c0_0 = arith.constant 0 : index
    %c0_1 = arith.constant 0 : index
    %0 = vector.load %arg3[%c0, %c0_0, %c0_1] : memref<1x16x64xbf16, #tpu.memory_space<vmem>>, vector<1x16x64xbf16>
    %1 = vector.shape_cast %0 : vector<1x16x64xbf16> to vector<16x64xbf16>
    %c0_2 = arith.constant 0 : index
    %c0_3 = arith.constant 0 : index
    %c0_4 = arith.constant 0 : index
    %2 = vector.load %arg2[%c0_2, %c0_3, %c0_4] : memref<1x16x128xbf16, #tpu.memory_space<vmem>>, vector<1x16x128xbf16>
    %3 = vector.shape_cast %2 : vector<1x16x128xbf16> to vector<16x128xbf16>
    %cst = arith.constant dense<0.000000e+00> : vector<64x128xf32>
    %4 = tpu.matmul %1, %3, %cst {dimension_numbers = #tpu.dot_dimension_numbers<[0], [0], [1], [1], [0, 1, 1, 1], [], []>} : vector<16x64xbf16>, vector<16x128xbf16>, vector<64x128xf32> -> vector<64x128xf32>
    %cst_5 = arith.constant dense<0xFF800000> : vector<128xf32>
    %5 = vector.multi_reduction <maximumf>, %4, %cst_5 [0] : vector<64x128xf32> to vector<128xf32>
    %6 = vector.shape_cast %5 : vector<128xf32> to vector<1x128xf32>
    %7 = vector.broadcast %6 : vector<1x128xf32> to vector<64x128xf32>
    %8 = arith.subf %4, %7 : vector<64x128xf32>
    %9 = math.exp %8 : vector<64x128xf32>
    %cst_6 = arith.constant dense<0.000000e+00> : vector<128xf32>
    %10 = vector.multi_reduction <add>, %9, %cst_6 [0] : vector<64x128xf32> to vector<128xf32>
    %11 = vector.shape_cast %10 : vector<128xf32> to vector<1x128xf32>
    %c0_7 = arith.constant 0 : index
    %c0_8 = arith.constant 0 : index
    %c0_9 = arith.constant 0 : index
    %12 = vector.load %arg4[%c0_7, %c0_8, %c0_9] : memref<1x64x64xbf16, #tpu.memory_space<vmem>>, vector<1x64x64xbf16>
    %13 = vector.shape_cast %12 : vector<1x64x64xbf16> to vector<64x64xbf16>
    %14 = arith.truncf %9 : vector<64x128xf32> to vector<64x128xbf16>
    %cst_10 = arith.constant dense<0.000000e+00> : vector<64x128xf32>
    %15 = tpu.matmul %13, %14, %cst_10 {dimension_numbers = #tpu.dot_dimension_numbers<[1], [0], [0], [1], [0, 0, 1, 1], [], []>} : vector<64x64xbf16>, vector<64x128xbf16>, vector<64x128xf32> -> vector<64x128xf32>
    %16 = tpu.reciprocal %11 : vector<1x128xf32> -> vector<1x128xf32>
    %17 = vector.broadcast %16 : vector<1x128xf32> to vector<64x128xf32>
    %18 = arith.mulf %15, %17 : vector<64x128xf32>
    %c0_11 = arith.constant 0 : index
    %c0_12 = arith.constant 0 : index
    %19 = vector.load %arg6[%c0_11, %c0_12] : memref<128x64xbf16, #tpu.memory_space<vmem>>, vector<128x64xbf16>
    %20 = arith.truncf %18 : vector<64x128xf32> to vector<64x128xbf16>
    %cst_13 = arith.constant dense<0.000000e+00> : vector<128x128xf32>
    %21 = tpu.matmul %19, %20, %cst_13 {dimension_numbers = #tpu.dot_dimension_numbers<[1], [0], [0], [1], [0, 0, 1, 1], [], []>} : vector<128x64xbf16>, vector<64x128xbf16>, vector<128x128xf32> -> vector<128x128xf32>
    %c0_14 = arith.constant 0 : index
    %c0_15 = arith.constant 0 : index
    %c0_16 = arith.constant 0 : index
    %22 = vector.load %arg5[%c0_14, %c0_15, %c0_16] : memref<1x128x128xf32, #tpu.memory_space<vmem>>, vector<1x128x128xf32>
    %23 = vector.shape_cast %22 : vector<1x128x128xf32> to vector<128x128xf32>
    %24 = arith.addf %21, %23 : vector<128x128xf32>
    %c0_17 = arith.constant 0 : index
    %c0_18 = arith.constant 0 : index
    %c0_19 = arith.constant 0 : index
    %25 = vector.load %arg7[%c0_17, %c0_18, %c0_19] : memref<1x128x128xf32, #tpu.memory_space<vmem>>, vector<1x128x128xf32>
    %26 = vector.shape_cast %25 : vector<1x128x128xf32> to vector<128x128xf32>
    %27 = vector.shape_cast %24 : vector<128x128xf32> to vector<1x128x128xf32>
    tpu.vector_store %arg7[%c0_17, %c0_18, %c0_19], %27 {strides = array<i32>} : memref<1x128x128xf32, #tpu.memory_space<vmem>>, vector<1x128x128xf32>,
    return
  }
  func.func @transform_0(%arg0: i32, %arg1: i32) -> (i32, i32, i32) {
    %c0_i32 = arith.constant 0 : i32
    %c0_i32_0 = arith.constant 0 : i32
    return %arg0, %c0_i32, %arg1 : i32, i32, i32
  }
  func.func @transform_1(%arg0: i32, %arg1: i32) -> (i32, i32, i32) {
    %c0_i32 = arith.constant 0 : i32
    %c0_i32_0 = arith.constant 0 : i32
    %c0_i32_1 = arith.constant 0 : i32
    return %arg0, %c0_i32, %c0_i32_0 : i32, i32, i32
  }
  func.func @transform_2(%arg0: i32, %arg1: i32) -> (i32, i32, i32) {
    %c0_i32 = arith.constant 0 : i32
    %c0_i32_0 = arith.constant 0 : i32
    %c0_i32_1 = arith.constant 0 : i32
    return %arg0, %c0_i32, %c0_i32_0 : i32, i32, i32
  }
  func.func @transform_3(%arg0: i32, %arg1: i32) -> (i32, i32, i32) {
    %c0_i32 = arith.constant 0 : i32
    %c0_i32_0 = arith.constant 0 : i32
    return %arg0, %c0_i32, %arg1 : i32, i32, i32
  }
  func.func @transform_4(%arg0: i32, %arg1: i32) -> (i32, i32) {
    %c0_i32 = arith.constant 0 : i32
    %c0_i32_0 = arith.constant 0 : i32
    %c0_i32_1 = arith.constant 0 : i32
    return %c0_i32, %c0_i32_0 : i32, i32
  }
  func.func @transform_5(%arg0: i32, %arg1: i32) -> (i32, i32, i32) {
    %c0_i32 = arith.constant 0 : i32
    %c0_i32_0 = arith.constant 0 : i32
    return %arg0, %c0_i32, %arg1 : i32, i32, i32
  }
}

</mosaic_0001>

<bundles_post_ra>
// kernel: attention_forward.3
= control target key start
LH: loop header
LB: loop body
LE: loop exit
PB: predicated region body
PF: predicated region fallthrough
CT: control target
= control target key end

     0   :  { %s1325_s18 = smov 0   ;;  %s1327_s19 = smov 0   ;;  %s1557_s0 = inlined_call_operand.vmem [shape: bf16[2,16,256], index: 0, kind: input, shape index: {}]   ;;  %s1558_s1 = inlined_call_operand.vmem [shape: bf16[2,16,64], index: 1, kind: input, shape index: {}]   ;;  %s1559_s2 = inlined_call_operand.vmem [shape: bf16[2,64,64], index: 2, kind: input, shape index: {}]   ;;  %s1560_s3 = inlined_call_operand.vmem [shape: f32[2,128,256], index: 3, kind: input, shape index: {}]   ;;  %s1561_s4 = inlined_call_operand.vmem [shape: bf16[128,64], index: 4, kind: input, shape index: {}]   ;;  %s1562_s5 = inlined_call_operand.vmem [shape: f32[2,128,256], index: 5, kind: output, shape index: {}]  }
   0x1   :  { %s1329_s20 = smov 0   ;;  %s1331_s21 = smov 0  }
   0x2   :  { %s1333_s22 = smov 0   ;;  %s1335_s23 = smov 0  }
   0x3   :  { %s1337_s24 = smov 0  }
   0x4 LB: > { %s24_s25 = sadd.s32 1, %s1285_s22  ;;  %s27_s26 = sadd.s32 1, %s1289_s23  ;;  %s1293_s24 = sphi %s1337_s24, %s15_s24   ;;  %s1289_s23 = sphi %s1335_s23, %s1570_s23   ;;  %s1285_s22 = sphi %s1333_s22, %s1569_s22   ;;  %s1281_s21 = sphi %s1331_s21, %s1568_s21   ;;  %s1277_s20 = sphi %s1329_s20, %s1567_s20   ;;  %s1273_s19 = sphi %s1327_s19, %s1566_s19   ;;  %s1269_s18 = sphi %s1325_s18, %s1565_s18  }
   0x5   : > { %p25_p0 = scmp.ge.s32.totalorder %s24_s25, 2  ;;  %s1049_s27 = sadd.s32 4294967295, %s1293_s24  }
   0x6   : > { %p43_p1 = scmp.ne.s32.totalorder %s1273_s19, %s1269_s18  ;;  %p44_p2 = scmp.eq.s32.totalorder %s1293_s24, 0 }
   0x7   : > { %s1572_s25 = smov (%p25_p0, %s24_s25), 0  ;;  %s1574_s26 = smov (!%p25_p0, %s27_s26), %s1289_s23 }
   0x8   : > { %p29_p3 = scmp.ge.s32.totalorder %s1574_s26, 2  ;;  %p176_p4 = scmp.eq.s32.totalorder %s1049_s27, 3 }
   0x9   : > { %s32_s28 = ssub.s32 %s1285_s22, %s1572_s25  ;;  %p1371_p5 = por %p44_p2, %p43_p1 }
   0xa   : > { %s1576_s26 = smov (%p29_p3, %s1574_s26), 0  ;;  %p1377_p6 = por %p176_p4, %p43_p1 }
   0xb   : > { %s31_s6 = ssub.s32 %s1289_s23, %s1576_s26  ;;  %s36_s8 = sadd.s32 1, %s1273_s19 }
   0xc   : > { %s33_s7 = sor.u32 %s32_s28, %s31_s6  ;;  %p1052_p8 = scmp.ge.s32.totalorder %s1293_s24, 4 }
   0xd   : > { %p34_p7 = scmp.eq.s32.totalorder %s33_s7, 0 }
   0xe   : > { %201 = sbr.rel (%p1052_p8) target bundleno = 49 (0x31), region = 20 }
   0xf   : > { %s1385_s9 = scalar_select %p34_p7, %s1273_s19, %s36_s8  }
  0x13   : > { %204 = sbr.rel (!%p1371_p5) target bundleno = 27 (0x1b), region = 24  ;;  %s206_s10 = sand.u32 (%p1371_p5), 1, %s1273_s19  }
  0x14   : > { %s1054_s11 = sshll.u32 (%p1371_p5), %s1289_s23, 2  ;;  %s1053_s12 = sshll.u32 (%p1371_p5), %s206_s10, 3 }
  0x15   : > { %s210_s13 = sadd.s32 (%p1371_p5), %s1285_s22, %s1054_s11  ;;  %s208_s27 = scalar_lea.vmem (%p1371_p5), [#allocation2], %s1053_s12 }
  0x16   : > { %s1055_s14 = sshll.u32 (%p1371_p5), %s210_s13, 2 }
  0x17   : > { %s212_s17 = scalar_lea.vmem (%p1371_p5), %s1557_s0, %s1055_s14 }
  0x18   : > { %v229_v0 = vld [vmem:[%s212_s17] sm:$0xf]  ;;  %v231_v1 = vld [vmem:[%s212_s17 + $0x8] sm:$0xf] }
  0x19   : > { %230 = vst [vmem:[%s208_s27] sm:$0xf] %v229_v0 }
  0x1a   : > { %232 = vst [vmem:[%s208_s27 + $0x4] sm:$0xf] %v231_v1 }
  0x1b PF: > { %276 = sbr.rel (!%p1371_p5) target bundleno = 49 (0x31), region = 73  ;;  %s278_s28 = sand.u32 (%p1371_p5), 1, %s1273_s19  }
  0x1c   : > { %s1057_s6 = sshll.u32 (%p1371_p5), %s1289_s23, 5  ;;  %s1056_s7 = sshll.u32 (%p1371_p5), %s278_s28, 7 }
  0x1d   : > { %s282_s8 = sadd.s32 (%p1371_p5), %s1285_s22, %s1057_s6  ;;  %s280_s29 = scalar_lea.vmem (%p1371_p5), [#allocation3], %s1056_s7 }
  0x1e   : > { %s1058_s10 = sshll.u32 (%p1371_p5), %s282_s8, 3 }
  0x1f   : > { %s1404_s14 = scalar_lea.vmem (%p1371_p5), %s1560_s3, %s1058_s10 }
  0x20   : > { %v343_v2 = vld [vmem:[%s1404_s14] sm:$0xff]  ;;  %v345_v3 = vld [vmem:[%s1404_s14 + $0x10] sm:$0xff] }
  0x21   : > { %v347_v4 = vld [vmem:[%s1404_s14 + $0x20] sm:$0xff]  ;;  %344 = vst [vmem:[%s280_s29] sm:$0xff] %v343_v2  ;;  %v349_v5 = vld [vmem:[%s1404_s14 + $0x30] sm:$0xff] }
  0x22   : > { %346 = vst [vmem:[%s280_s29 + $0x8] sm:$0xff] %v345_v3  ;;  %v351_v6 = vld [vmem:[%s1404_s14 + $0x40] sm:$0xff]  ;;  %v353_v7 = vld [vmem:[%s1404_s14 + $0x50] sm:$0xff] }
  0x23   : > { %348 = vst [vmem:[%s280_s29 + $0x10] sm:$0xff] %v347_v4  ;;  %v355_v8 = vld [vmem:[%s1404_s14 + $0x60] sm:$0xff]  ;;  %v357_v9 = vld [vmem:[%s1404_s14 + $0x70] sm:$0xff] }
  0x24   : > { %350 = vst [vmem:[%s280_s29 + $0x18] sm:$0xff] %v349_v5  ;;  %v359_v10 = vld [vmem:[%s1404_s14 + $0x80] sm:$0xff]  ;;  %v361_v11 = vld [vmem:[%s1404_s14 + $0x90] sm:$0xff] }
  0x25   : > { %352 = vst [vmem:[%s280_s29 + $0x20] sm:$0xff] %v351_v6  ;;  %v363_v12 = vld [vmem:[%s1404_s14 + $0xa0] sm:$0xff]  ;;  %v365_v13 = vld [vmem:[%s1404_s14 + $0xb0] sm:$0xff] }
  0x26   : > { %354 = vst [vmem:[%s280_s29 + $0x28] sm:$0xff] %v353_v7  ;;  %v367_v14 = vld [vmem:[%s1404_s14 + $0xc0] sm:$0xff]  ;;  %v369_v15 = vld [vmem:[%s1404_s14 + $0xd0] sm:$0xff] }
  0x27   : > { %356 = vst [vmem:[%s280_s29 + $0x30] sm:$0xff] %v355_v8  ;;  %v371_v16 = vld [vmem:[%s1404_s14 + $0xe0] sm:$0xff]  ;;  %v373_v17 = vld [vmem:[%s1404_s14 + $0xf0] sm:$0xff] }
  0x28   : > { %358 = vst [vmem:[%s280_s29 + $0x38] sm:$0xff] %v357_v9 }
  0x29   : > { %360 = vst [vmem:[%s280_s29 + $0x40] sm:$0xff] %v359_v10 }
  0x2a   : > { %362 = vst [vmem:[%s280_s29 + $0x48] sm:$0xff] %v361_v11 }
  0x2b   : > { %364 = vst [vmem:[%s280_s29 + $0x50] sm:$0xff] %v363_v12 }
  0x2c   : > { %366 = vst [vmem:[%s280_s29 + $0x58] sm:$0xff] %v365_v13 }
  0x2d   : > { %368 = vst [vmem:[%s280_s29 + $0x60] sm:$0xff] %v367_v14 }
  0x2e   : > { %370 = vst [vmem:[%s280_s29 + $0x68] sm:$0xff] %v369_v15 }
  0x2f   : > { %372 = vst [vmem:[%s280_s29 + $0x70] sm:$0xff] %v371_v16 }
  0x30   : > { %374 = vst [vmem:[%s280_s29 + $0x78] sm:$0xff] %v373_v17 }
  0x31 PF: > { %p1059_p9 = scmp.ge.s32.totalorder %s1293_s24, 1  ;;  %p379_p10 = scmp.lt.s32.totalorder %s1293_s24, 5 }
  0x33   : > { %p380_p11 = pnand %p1059_p9, %p379_p10 }
  0x34   : > { %p433_p12 = scmp.lt.s32.totalorder (!%p380_p11), %s1281_s21, 1  ;;  %s386_s12 = sand.u32 (!%p380_p11), 1, %s1269_s18  }
  0x35   : > { %383 = sbr.rel (%p380_p11) target bundleno = 871 (0x367), region = 111  ;;  %s1060_s15 = sshll.u32 (!%p380_p11), %s386_s12, 3 }
  0x36   : > { %s388_s27 = scalar_lea.vmem (!%p380_p11), [#allocation2], %s1060_s15 }
  0x3a   : > { %s1429_s16 = scalar_select %p433_p12, %s1281_s21, 1  ;;  %v1147_v18 = vld [vmem:[%s388_s27] sm:$0xff]  ;;  %vm476_vm0 = vcmask 130048   ;;  %vm600_vm1 = vcmask 523264  }
  0x3b   : > { %496 = vmatpush.bf16.msra.mxu0 %v1147_v18  ;;  %s1140_s18 = sshll.u32 (%p1377_p6), %s1281_s21, 5 }
  0x3c   : > { %s1144_s17 = sshll.u32 %s1429_s16, 3  ;;  %s1145_s8 = sshll.u32 %s1429_s16, 5 }
  0x3d   : > { %s437_s7 = scalar_lea.vmem %s1558_s1, %s1144_s17  ;;  %s442_s13 = scalar_lea.vmem %s1559_s2, %s1145_s8 }
  0x3e   : > { %v1146_v19 = vld [vmem:[%s437_s7] sm:$0xff]  ;;  %v1149_v17 = vld [vmem:[%s442_s13 + $0x8] sm:$0xff]  ;;  %v1150_v18 = vld [vmem:[%s442_s13 + $0x10] sm:$0xff]  ;;  %s1061_s16 = sshll.u32 %s386_s12, 7  ;;  %s837_s12 = sadd.s32 (%p1377_p6), %s1277_s20, %s1140_s18 }
  0x3f   : > { %454 = vxpose.xlu0.c.b16.start.end [1/1] (short) (narrow) %v1146_v19, 64  ;;  %v1148_v16 = vld [vmem:[%s442_s13] sm:$0xff]  ;;  %v1151_v19 = vld [vmem:[%s442_s13 + $0x18] sm:$0xff]  ;;  %s1477_s17 = scalar_lea.vmem [#allocation3], %s1061_s16  ;;  %s1481_s27 = scalar_lea.vmem [#allocation4], %s1061_s16 }
  0x40   : > { %s1141_s28 = sshll.u32 (%p1377_p6), %s837_s12, 3 }
  0x41   : > { %s839_s30 = scalar_lea.vmem (%p1377_p6), %s1562_s5, %s1141_s28 }
  0xeb   : > { %v462_v20 = vpop.trf.xlu0 }
  0xec   : > { %1075 = vmatmul.msk.bf16.vlgmr.msra.gmra.mxu0 %vm476_vm0, %v462_v20 }
  0xfb   : > { %v463_v21 = vpop.trf.xlu0 }
  0xfc   : > { %1076 = vmatmul.msk.bf16.gmra.mxu0 %vm476_vm0, %v463_v21 }
 0x10b   : > { %v464_v22 = vpop.trf.xlu0 }
 0x10c   : > { %1077 = vmatmul.msk.bf16.gmra.mxu0 %vm476_vm0, %v464_v22 }
 0x11b   : > { %v465_v23 = vpop.trf.xlu0 }
 0x11c   : > { %1078 = vmatmul.msk.bf16.gmra.mxu0 %vm476_vm0, %v465_v23 }
 0x169   : > { %v498_v24 = vpop.f32.mrf.mxu0 }
 0x171   : > { %v500_v25 = vpop.f32.mrf.mxu0 }
 0x179   : > { %v503_v26 = vpop.f32.mrf.mxu0 }
 0x181   : > { %v505_v27 = vpop.f32.mrf.mxu0 }
 0x189   : > { %v508_v28 = vpop.f32.mrf.mxu0 }
 0x18a   : > { %v518_v33 = vmax.f32 %v498_v24, %v508_v28 }
 0x191   : > { %v510_v29 = vpop.f32.mrf.mxu0 }
 0x192   : > { %v519_v31 = vmax.f32 %v500_v25, %v510_v29 }
 0x194   : > { %v522_v36 = vmax.f32 %v518_v33, %v519_v31 }
 0x199   : > { %v513_v30 = vpop.f32.mrf.mxu0 }
 0x19a   : > { %v520_v34 = vmax.f32 %v503_v26, %v513_v30 }
 0x1a1   : > { %v515_v32 = vpop.f32.mrf.mxu0 }
 0x1a2   : > { %v521_v35 = vmax.f32 %v505_v27, %v515_v32 }
 0x1a4   : > { %v523_v37 = vmax.f32 %v520_v34, %v521_v35 }
 0x1a6   : > { %v524_v38 = vmax.f32 %v522_v36, %v523_v37 }
 0x1a8   : > { %v525_v39 = vrot.slane %v524_v38, 4 }
 0x1aa   : > { %v526_v40 = vmax.f32 %v524_v38, %v525_v39 }
 0x1ac   : > { %v527_v41 = vrot.slane %v526_v40, 2 }
 0x1ae   : > { %v528_v42 = vmax.f32 %v526_v40, %v527_v41 }
 0x1b0   : > { %v529_v43 = vrot.slane %v528_v42, 1 }
 0x1b2   : > { %v530_v44 = vmax.f32 %v528_v42, %v529_v43 }
 0x1b4   : > { %v531_v45 = vsub.f32 %v498_v24, %v530_v44  ;;  %v532_v46 = vsub.f32 %v500_v25, %v530_v44  ;;  %v533_v47 = vsub.f32 %v503_v26, %v530_v44  ;;  %v534_v48 = vsub.f32 %v505_v27, %v530_v44 }
 0x1b5   : > { %v535_v49 = vsub.f32 %v508_v28, %v530_v44  ;;  %v537_v50 = vsub.f32 %v513_v30, %v530_v44  ;;  %v538_v53 = vsub.f32 %v515_v32, %v530_v44  ;;  %v536_v56 = vsub.f32 %v510_v29, %v530_v44 }
 0x1b6   : > { %v539_v51 = vmul.f32 1.442695, %v531_v45  ;;  %v541_v52 = vmul.f32 1.442695, %v532_v46  ;;  %v543_v54 = vmul.f32 1.442695, %v533_v47 }
 0x1b7   : > { %v545_v55 = vmul.f32 1.442695, %v534_v48  ;;  %v547_v57 = vmul.f32 1.442695, %v535_v49  ;;  %v551_v58 = vmul.f32 1.442695, %v537_v50 }
 0x1b8   : > { %1221 = vpow2.f32 %v539_v51  ;;  %v553_v59 = vmul.f32 1.442695, %v538_v53  ;;  %v549_v60 = vmul.f32 1.442695, %v536_v56  ;;  %v1152_v56 = vld [vmem:[%s1561_s4] sm:$0xff] }
 0x1b9   : > { %1223 = vpow2.f32 %v541_v52 }
 0x1ba   : > { %1225 = vpow2.f32 %v543_v54 }
 0x1bb   : > { %1227 = vpow2.f32 %v545_v55 }
 0x1bc   : > { %1229 = vpow2.f32 %v547_v57  ;;  %v1156_v57 = vld [vmem:[%s1561_s4 + $0x20] sm:$0xff] }
 0x1bd   : > { %1231 = vpow2.f32 %v551_v58  ;;  %v1153_v58 = vld [vmem:[%s1561_s4 + $0x8] sm:$0xff] }
 0x1be   : > { %v1222_v61 = vpop.eup %1221  ;;  %1233 = vpow2.f32 %v553_v59  ;;  %v1157_v59 = vld [vmem:[%s1561_s4 + $0x28] sm:$0xff] }
 0x1bf   : > { %v1224_v62 = vpop.eup %1223  ;;  %1235 = vpow2.f32 %v549_v60  ;;  %v1154_v60 = vld [vmem:[%s1561_s4 + $0x10] sm:$0xff] }
 0x1c0   : > { %v555_v63 = vadd.f32 %v1224_v62, %v1222_v61  ;;  %v1226_v0 = vpop.eup %1225  ;;  %v576_v15 = vpack.c.bf16 %v1224_v62, %v1222_v61  ;;  %v1158_v61 = vld [vmem:[%s1561_s4 + $0x30] sm:$0xff]  ;;  %v1155_v62 = vld [vmem:[%s1561_s4 + $0x18] sm:$0xff] }
 0x1c1   : > { %v1228_v1 = vpop.eup %1227 }
 0x1c2   : > { %v556_v2 = vadd.f32 %v1226_v0, %v555_v63  ;;  %v1230_v3 = vpop.eup %1229  ;;  %v577_v14 = vpack.c.bf16 %v1228_v1, %v1226_v0  ;;  %v1159_v63 = vld [vmem:[%s1561_s4 + $0x38] sm:$0xff]  ;;  %v684_v0 = vld [vmem:[%s1477_s17] sm:$0xff] }
 0x1c3   : > { %v1232_v4 = vpop.eup %1231 }
 0x1c4   : > { %v557_v5 = vadd.f32 %v1228_v1, %v556_v2  ;;  %v1234_v6 = vpop.eup %1233  ;;  %v692_v1 = vld [vmem:[%s1477_s17 + $0x40] sm:$0xff] }
 0x1c5   : > { %v579_v8 = vpack.c.bf16 %v1234_v6, %v1232_v4  ;;  %v1236_v9 = vpop.eup %1235 }
 0x1c6   : > { %v558_v7 = vadd.f32 %v1230_v3, %v557_v5  ;;  %v578_v12 = vpack.c.bf16 %v1236_v9, %v1230_v3 }
 0x1c7   : > { %617 = vmatpush.bf16.msra.mxu1 %v579_v8 }
 0x1c8   : > { %v559_v10 = vadd.f32 %v1236_v9, %v558_v7  ;;  %v693_v7 = vld [vmem:[%s1477_s17 + $0x48] sm:$0xff] }
 0x1ca   : > { %v560_v11 = vadd.f32 %v1232_v4, %v559_v10 }
 0x1cb   : > { %618 = vmatpush.bf16.msra.mxu1 %v578_v12  ;;  %v686_v12 = vld [vmem:[%s1477_s17 + $0x10] sm:$0xff] }
 0x1cc   : > { %v561_v13 = vadd.f32 %v1234_v6, %v560_v11  ;;  %v685_v6 = vld [vmem:[%s1477_s17 + $0x8] sm:$0xff] }
 0x1ce   : > { %v562_v20 = vrot.slane %v561_v13, 4 }
 0x1cf   : > { %619 = vmatpush.bf16.msra.mxu1 %v577_v14 }
 0x1d0   : > { %v563_v21 = vadd.f32 %v562_v20, %v561_v13  ;;  %v694_v13 = vld [vmem:[%s1477_s17 + $0x50] sm:$0xff] }
 0x1d2   : > { %v564_v22 = vrot.slane %v563_v21, 2 }
 0x1d3   : > { %620 = vmatpush.bf16.msra.mxu1 %v576_v15 }
 0x1d4   : > { %v565_v23 = vadd.f32 %v564_v22, %v563_v21 }
 0x1d6   : > { %1095 = vmatmul.msk.bf16.vlgmr.msra.gmra.mxu1 %vm600_vm1, %v1148_v16  ;;  %v566_v24 = vrot.slane %v565_v23, 1 }
 0x1d8   : > { %v567_v25 = vadd.f32 %v566_v24, %v565_v23  ;;  %v688_v24 = vld [vmem:[%s1477_s17 + $0x20] sm:$0xff] }
 0x1da   : > { %1237 = vrcp.f32 %v567_v25  ;;  %v653_v31 = vand.u32 2147483648, %v567_v25  ;;  %vm647_vm3 = vweird.f32 %v567_v25  ;;  %v651_v32 = vand.u32 2147483647, %v567_v25 }
 0x1dc   : > { %v654_v34 = vor.u32 1.1754944e-38, %v653_v31  ;;  %vm652_vm5 = vcmp.eq.f32.partialorder %v651_v32, 8.507059e+37  ;;  %v697_v31 = vld [vmem:[%s1477_s17 + $0x68] sm:$0xff] }
 0x1e0   : > { %v1238_v26 = vpop.eup %1237 }
 0x1e1   : > { %v643_v27 = vmul.f32 %v1238_v26, %v567_v25  ;;  %vm648_vm2 = vweird.f32 %v1238_v26  ;;  %v696_v25 = vld [vmem:[%s1477_s17 + $0x60] sm:$0xff] }
 0x1e2   : > { %vm649_vm4 = vmor %vm647_vm3, %vm648_vm2 }
 0x1e3   : > { %v644_v28 = vsub.f32 1.0, %v643_v27 }
 0x1e5   : > { %v645_v29 = vmul.f32 %v1238_v26, %v644_v28 }
 0x1e6   : > { %1096 = vmatmul.msk.bf16.gmra.mxu1 %vm600_vm1, %v1149_v17 }
 0x1e7   : > { %v646_v30 = vadd.f32 %v1238_v26, %v645_v29 }
 0x1e9   : > { %v650_v33 = vsel %vm649_vm4, %v1238_v26, %v646_v30  ;;  %v689_v30 = vld [vmem:[%s1477_s17 + $0x28] sm:$0xff] }
 0x1ea   : > { %v655_v36 = vsel %vm652_vm5, %v654_v34, %v650_v33 }
 0x1f6   : > { %1097 = vmatmul.msk.bf16.gmra.mxu1 %vm600_vm1, %v1150_v18  ;;  %v687_v18 = vld [vmem:[%s1477_s17 + $0x18] sm:$0xff] }
 0x206   : > { %1098 = vmatmul.msk.bf16.gmra.mxu1 %vm600_vm1, %v1151_v19  ;;  %v695_v19 = vld [vmem:[%s1477_s17 + $0x58] sm:$0xff] }
 0x253   : > { %v622_v35 = vpop.f32.mrf.mxu1 }
 0x254   : > { %v656_v37 = vmul.f32 %v655_v36, %v622_v35 }
 0x25b   : > { %v624_v38 = vpop.f32.mrf.mxu1 }
 0x25c   : > { %v657_v39 = vmul.f32 %v655_v36, %v624_v38 }
 0x25e   : > { %v680_v40 = vpack.c.bf16 %v657_v39, %v656_v37  ;;  %v698_v37 = vld [vmem:[%s1477_s17 + $0x70] sm:$0xff] }
 0x263   : > { %v627_v41 = vpop.f32.mrf.mxu1 }
 0x264   : > { %v658_v54 = vmul.f32 %v655_v36, %v627_v41 }
 0x26b   : > { %v629_v42 = vpop.f32.mrf.mxu1 }
 0x26c   : > { %v659_v52 = vmul.f32 %v655_v36, %v629_v42  ;;  %v691_v42 = vld [vmem:[%s1477_s17 + $0x38] sm:$0xff] }
 0x26e   : > { %v681_v55 = vpack.c.bf16 %v659_v52, %v658_v54 }
 0x273   : > { %v632_v43 = vpop.f32.mrf.mxu1 }
 0x274   : > { %v660_v51 = vmul.f32 %v655_v36, %v632_v43  ;;  %v699_v43 = vld [vmem:[%s1477_s17 + $0x78] sm:$0xff] }
 0x27b   : > { %v634_v44 = vpop.f32.mrf.mxu1 }
 0x27c   : > { %v661_v49 = vmul.f32 %v655_v36, %v634_v44 }
 0x27e   : > { %v682_v53 = vpack.c.bf16 %v661_v49, %v660_v51 }
 0x283   : > { %v637_v45 = vpop.f32.mrf.mxu1 }
 0x284   : > { %v662_v47 = vmul.f32 %v655_v36, %v637_v45 }
 0x28b   : > { %v639_v46 = vpop.f32.mrf.mxu1 }
 0x28c   : > { %v663_v48 = vmul.f32 %v655_v36, %v639_v46  ;;  %v690_v36 = vld [vmem:[%s1477_s17 + $0x30] sm:$0xff] }
 0x28e   : > { %v683_v50 = vpack.c.bf16 %v663_v48, %v662_v47 }
 0x290   : > { %768 = vmatpush.bf16.msra.mxu2 %v683_v50  ;;  %1160 = vmatpush.bf16.msra.mxu3 %v683_v50 }
 0x294   : > { %769 = vmatpush.bf16.msra.mxu2 %v682_v53  ;;  %1161 = vmatpush.bf16.msra.mxu3 %v682_v53 }
 0x298   : > { %770 = vmatpush.bf16.msra.mxu2 %v681_v55  ;;  %1162 = vmatpush.bf16.msra.mxu3 %v681_v55 }
 0x29c   : > { %771 = vmatpush.bf16.msra.mxu2 %v680_v40  ;;  %1163 = vmatpush.bf16.msra.mxu3 %v680_v40 }
 0x29f   : > { %1131 = vmatmul.msk.bf16.vlgmr.msra.gmra.mxu2 %vm600_vm1, %v1152_v56  ;;  %1135 = vmatmul.msk.bf16.vlgmr.msra.gmra.mxu3 %vm600_vm1, %v1156_v57 }
 0x2af   : > { %1132 = vmatmul.msk.bf16.gmra.mxu2 %vm600_vm1, %v1153_v58  ;;  %1136 = vmatmul.msk.bf16.gmra.mxu3 %vm600_vm1, %v1157_v59 }
 0x2bf   : > { %1133 = vmatmul.msk.bf16.gmra.mxu2 %vm600_vm1, %v1154_v60  ;;  %1137 = vmatmul.msk.bf16.gmra.mxu3 %vm600_vm1, %v1158_v61 }
 0x2cf   : > { %1134 = vmatmul.msk.bf16.gmra.mxu2 %vm600_vm1, %v1155_v62  ;;  %1138 = vmatmul.msk.bf16.gmra.mxu3 %vm600_vm1, %v1159_v63 }
 0x322   : > { %v773_v2 = vpop.f32.mrf.mxu2  ;;  %v793_v3 = vpop.f32.mrf.mxu3 }
 0x323   : > { %v774_v4 = vadd.f32 %v773_v2, %v684_v0  ;;  %v794_v5 = vadd.f32 %v793_v3, %v692_v1 }
 0x325   : > { %813 = vst [vmem:[%s1481_s27] sm:$0xff] %v774_v4 }
 0x326   : > { %821 = vst [vmem:[%s1481_s27 + $0x40] sm:$0xff] %v794_v5 }
 0x32a   : > { %v775_v8 = vpop.f32.mrf.mxu2  ;;  %v795_v9 = vpop.f32.mrf.mxu3 }
 0x32b   : > { %v776_v10 = vadd.f32 %v775_v8, %v685_v6  ;;  %v796_v11 = vadd.f32 %v795_v9, %v693_v7 }
 0x32c   : > { %v898_v48 = vld [vmem:[%s1481_s27] sm:$0xff] (%p1377_p6) }
 0x32d   : > { %814 = vst [vmem:[%s1481_s27 + $0x8] sm:$0xff] %v776_v10  ;;  %v914_v56 = vld [vmem:[%s1481_s27 + $0x40] sm:$0xff] (%p1377_p6) }
 0x32e   : > { %822 = vst [vmem:[%s1481_s27 + $0x48] sm:$0xff] %v796_v11 }
 0x32f   : > { %899 = vst [vmem:[%s839_s30] sm:$0xff] (%p1377_p6), %v898_v48 }
 0x330   : > { %915 = vst [vmem:[%s839_s30 + $0x80] sm:$0xff] (%p1377_p6), %v914_v56 }
 0x332   : > { %v778_v14 = vpop.f32.mrf.mxu2  ;;  %v798_v15 = vpop.f32.mrf.mxu3 }
 0x333   : > { %v779_v16 = vadd.f32 %v778_v14, %v686_v12  ;;  %v799_v17 = vadd.f32 %v798_v15, %v694_v13 }
 0x334   : > { %v900_v49 = vld [vmem:[%s1481_s27 + $0x8] sm:$0xff] (%p1377_p6) }
 0x335   : > { %815 = vst [vmem:[%s1481_s27 + $0x10] sm:$0xff] %v779_v16  ;;  %v916_v57 = vld [vmem:[%s1481_s27 + $0x48] sm:$0xff] (%p1377_p6) }
 0x336   : > { %823 = vst [vmem:[%s1481_s27 + $0x50] sm:$0xff] %v799_v17 }
 0x337   : > { %901 = vst [vmem:[%s839_s30 + $0x10] sm:$0xff] (%p1377_p6), %v900_v49 }
 0x338   : > { %917 = vst [vmem:[%s839_s30 + $0x90] sm:$0xff] (%p1377_p6), %v916_v57 }
 0x33a   : > { %v780_v20 = vpop.f32.mrf.mxu2  ;;  %v800_v21 = vpop.f32.mrf.mxu3 }
 0x33b   : > { %v781_v22 = vadd.f32 %v780_v20, %v687_v18  ;;  %v801_v23 = vadd.f32 %v800_v21, %v695_v19 }
 0x33c   : > { %v902_v50 = vld [vmem:[%s1481_s27 + $0x10] sm:$0xff] (%p1377_p6) }
 0x33d   : > { %816 = vst [vmem:[%s1481_s27 + $0x18] sm:$0xff] %v781_v22  ;;  %v918_v58 = vld [vmem:[%s1481_s27 + $0x50] sm:$0xff] (%p1377_p6) }
 0x33e   : > { %824 = vst [vmem:[%s1481_s27 + $0x58] sm:$0xff] %v801_v23 }
 0x33f   : > { %903 = vst [vmem:[%s839_s30 + $0x20] sm:$0xff] (%p1377_p6), %v902_v50 }
 0x340   : > { %919 = vst [vmem:[%s839_s30 + $0xa0] sm:$0xff] (%p1377_p6), %v918_v58 }
 0x342   : > { %v783_v26 = vpop.f32.mrf.mxu2  ;;  %v803_v27 = vpop.f32.mrf.mxu3 }
 0x343   : > { %v784_v28 = vadd.f32 %v783_v26, %v688_v24  ;;  %v804_v29 = vadd.f32 %v803_v27, %v696_v25 }
 0x344   : > { %v904_v51 = vld [vmem:[%s1481_s27 + $0x18] sm:$0xff] (%p1377_p6) }
 0x345   : > { %817 = vst [vmem:[%s1481_s27 + $0x20] sm:$0xff] %v784_v28  ;;  %v920_v59 = vld [vmem:[%s1481_s27 + $0x58] sm:$0xff] (%p1377_p6) }
 0x346   : > { %825 = vst [vmem:[%s1481_s27 + $0x60] sm:$0xff] %v804_v29 }
 0x347   : > { %905 = vst [vmem:[%s839_s30 + $0x30] sm:$0xff] (%p1377_p6), %v904_v51 }
 0x348   : > { %921 = vst [vmem:[%s839_s30 + $0xb0] sm:$0xff] (%p1377_p6), %v920_v59 }
 0x34a   : > { %v785_v32 = vpop.f32.mrf.mxu2  ;;  %v805_v33 = vpop.f32.mrf.mxu3 }
 0x34b   : > { %v786_v34 = vadd.f32 %v785_v32, %v689_v30  ;;  %v806_v35 = vadd.f32 %v805_v33, %v697_v31 }
 0x34c   : > { %v906_v52 = vld [vmem:[%s1481_s27 + $0x20] sm:$0xff] (%p1377_p6) }
 0x34d   : > { %818 = vst [vmem:[%s1481_s27 + $0x28] sm:$0xff] %v786_v34  ;;  %v922_v60 = vld [vmem:[%s1481_s27 + $0x60] sm:$0xff] (%p1377_p6) }
 0x34e   : > { %826 = vst [vmem:[%s1481_s27 + $0x68] sm:$0xff] %v806_v35 }
 0x34f   : > { %907 = vst [vmem:[%s839_s30 + $0x40] sm:$0xff] (%p1377_p6), %v906_v52 }
 0x350   : > { %923 = vst [vmem:[%s839_s30 + $0xc0] sm:$0xff] (%p1377_p6), %v922_v60 }
 0x352   : > { %v788_v38 = vpop.f32.mrf.mxu2  ;;  %v808_v39 = vpop.f32.mrf.mxu3 }
 0x353   : > { %v789_v40 = vadd.f32 %v788_v38, %v690_v36  ;;  %v809_v41 = vadd.f32 %v808_v39, %v698_v37 }
 0x354   : > { %v908_v53 = vld [vmem:[%s1481_s27 + $0x28] sm:$0xff] (%p1377_p6) }
 0x355   : > { %819 = vst [vmem:[%s1481_s27 + $0x30] sm:$0xff] %v789_v40  ;;  %v924_v61 = vld [vmem:[%s1481_s27 + $0x68] sm:$0xff] (%p1377_p6) }
 0x356   : > { %827 = vst [vmem:[%s1481_s27 + $0x70] sm:$0xff] %v809_v41 }
 0x357   : > { %909 = vst [vmem:[%s839_s30 + $0x50] sm:$0xff] (%p1377_p6), %v908_v53 }
 0x358   : > { %925 = vst [vmem:[%s839_s30 + $0xd0] sm:$0xff] (%p1377_p6), %v924_v61 }
 0x35a   : > { %v790_v44 = vpop.f32.mrf.mxu2  ;;  %v810_v45 = vpop.f32.mrf.mxu3  ;;  %835 = sbr.rel (!%p1377_p6) target bundleno = 871 (0x367), region = 123 }
 0x35b   : > { %v791_v46 = vadd.f32 %v790_v44, %v691_v42  ;;  %v811_v47 = vadd.f32 %v810_v45, %v699_v43 }
 0x35c   : > { %v910_v54 = vld [vmem:[%s1481_s27 + $0x30] sm:$0xff] (%p1377_p6) }
 0x35d   : > { %820 = vst [vmem:[%s1481_s27 + $0x38] sm:$0xff] %v791_v46  ;;  %v926_v62 = vld [vmem:[%s1481_s27 + $0x70] sm:$0xff] (%p1377_p6) }
 0x35e   : > { %828 = vst [vmem:[%s1481_s27 + $0x78] sm:$0xff] %v811_v47 }
 0x35f   : > { %911 = vst [vmem:[%s839_s30 + $0x60] sm:$0xff] %v910_v54 }
 0x360   : > { %927 = vst [vmem:[%s839_s30 + $0xe0] sm:$0xff] %v926_v62 }
 0x364   : > { %v912_v55 = vld [vmem:[%s1481_s27 + $0x38] sm:$0xff] }
 0x365   : > { %913 = vst [vmem:[%s839_s30 + $0x70] sm:$0xff] %v912_v55  ;;  %v928_v63 = vld [vmem:[%s1481_s27 + $0x78] sm:$0xff] }
 0x366   : > { %929 = vst [vmem:[%s839_s30 + $0xf0] sm:$0xff] %v928_v63 }
 0x367 PF: > { %s15_s24 = sadd.s32 1, %s1293_s24   ;;  %s1565_s18 = smov %s1273_s19 }
 0x368   : > { %p12_p13 = scmp.ge.s32.totalorder %s15_s24, 6   ;;  %s1566_s19 = smov %s1385_s9 }
 0x369   : > { %s1567_s20 = smov %s1285_s22  ;;  %s1568_s21 = smov %s1289_s23 }
 0x36a   : > { %s1569_s22 = smov %s1572_s25  ;;  %s1570_s23 = smov %s1576_s26 }
 0x36b   :  { %14 = sbr.rel (!%p12_p13) target bundleno = 4 (0x4), region = 206 }

// kernel: attention_forward.2
= control target key start
LH: loop header
LB: loop body
LE: loop exit
PB: predicated region body
PF: predicated region fallthrough
CT: control target
= control target key end

     0   :  { %s1464_s18 = smov 0   ;;  %s1466_s19 = smov 0   ;;  %s1837_s0 = inlined_call_operand.vmem [shape: f32[2,128,256], index: 0, kind: input, shape index: {}]   ;;  %s1838_s1 = inlined_call_operand.vmem [shape: bf16[96,128], index: 1, kind: input, shape index: {}]   ;;  %s1839_s2 = inlined_call_operand.vmem [shape: bf16[256,64], index: 2, kind: input, shape index: {}]   ;;  %s1840_s3 = inlined_call_operand.vmem [shape: bf16[2,16,256], index: 3, kind: output, shape index: {0}]   ;;  %s1841_s4 = inlined_call_operand.vmem [shape: bf16[2,16,64], index: 4, kind: output, shape index: {1}]   ;;  %s1842_s5 = inlined_call_operand.vmem [shape: bf16[2,64,64], index: 5, kind: output, shape index: {2}]  }
   0x1   :  { %s1468_s20 = smov 0  }
   0x2 LB: > { %s28_s21 = sadd.s32 1, %s1426_s19  ;;  %p1157_p0 = scmp.ge.s32.totalorder %s1430_s20, 1  ;;  %s1430_s20 = sphi %s1468_s20, %s16_s20   ;;  %s1426_s19 = sphi %s1466_s19, %s1844_s19   ;;  %s1422_s18 = sphi %s1464_s18, %s1843_s18  }
   0x3   : > { %p30_p1 = scmp.ge.s32.totalorder %s28_s21, 2  ;;  %p217_p2 = scmp.lt.s32.totalorder %s1430_s20, 3 }
   0x5   : > { %s1846_s21 = smov (%p30_p1, %s28_s21), 0  ;;  %p218_p3 = pnand %p1157_p0, %p217_p2 }
   0x6   : > { %p270_p4 = scmp.lt.s32.totalorder (!%p218_p3), %s1422_s18, 1  ;;  %s1432_s17 = smov (!%p218_p3), 112  }
   0x7   : > { %221 = sbr.rel (%p218_p3) target bundleno = 730 (0x2da), region = 32 }
   0xc   : > { %s1848_s18 = smov (!%p270_p4, %s1422_s18), 1  ;;  %v1260_v48 = vld [vmem:[%s1838_s1] sm:$0xff]  ;;  %v1261_v49 = vld [vmem:[%s1838_s1 + $0x8] sm:$0xff]  ;;  %v1262_v50 = vld [vmem:[%s1838_s1 + $0x10] sm:$0xff]  ;;  %vm543_vm0 = vcmask 916480   ;;  %vm674_vm1 = vcmask 1039360  }
   0xd   : > { %s1256_s22 = sshll.u32 %s1848_s18, 8  ;;  %v1263_v51 = vld [vmem:[%s1838_s1 + $0x18] sm:$0xff]  ;;  %v1264_v52 = vld [vmem:[%s1838_s1 + $0x20] sm:$0xff]  ;;  %v1265_v53 = vld [vmem:[%s1838_s1 + $0x28] sm:$0xff]  ;;  %s1257_s13 = sshll.u32 %s1848_s18, 4  ;;  %vm953_vm2 = vcmask 519168  }
   0xe   : > { %s1488_s25 = scalar_lea.vmem %s1837_s0, %s1256_s22  ;;  %s287_s16 = scalar_lea.vmem %s1840_s3, %s1257_s13 }
   0xf   : > { %v333_v0 = vld [vmem:[%s1488_s25 + $0xe0] sm:$0xff]  ;;  %v335_v1 = vld [vmem:[%s1488_s25 + $0xf0] sm:$0xff]  ;;  %v334_v2 = vld [vmem:[%s1488_s25 + $0xe8] sm:$0xff]  ;;  %s1433_s22 = smov 127   ;;  %s1259_s13 = sshll.u32 %s1848_s18, 5 }
  0x10   : > { %v351_v3 = vpack.c.bf16 %v335_v1, %v333_v0  ;;  %v336_v4 = vld [vmem:[%s1488_s25 + $0xf8] sm:$0xff]  ;;  %v329_v5 = vld [vmem:[%s1488_s25 + $0xc0] sm:$0xff]  ;;  %v331_v6 = vld [vmem:[%s1488_s25 + $0xd0] sm:$0xff] }
  0x11   : > { %v352_v7 = vpack.c.bf16 %v336_v4, %v334_v2  ;;  %v330_v8 = vld [vmem:[%s1488_s25 + $0xc8] sm:$0xff]  ;;  %v332_v9 = vld [vmem:[%s1488_s25 + $0xd8] sm:$0xff]  ;;  %v349_v10 = vpack.c.bf16 %v331_v6, %v329_v5  ;;  %v325_v12 = vld [vmem:[%s1488_s25 + $0xa0] sm:$0xff] }
  0x12   : > { %401 = vmatpush.bf16.msra.mxu0 %v351_v3  ;;  %v350_v11 = vpack.c.bf16 %v332_v9, %v330_v8  ;;  %v327_v13 = vld [vmem:[%s1488_s25 + $0xb0] sm:$0xff]  ;;  %v326_v14 = vld [vmem:[%s1488_s25 + $0xa8] sm:$0xff]  ;;  %v328_v15 = vld [vmem:[%s1488_s25 + $0xb8] sm:$0xff] }
  0x13   : > { %440 = vmatpush.bf16.msra.mxu1 %v352_v7  ;;  %v347_v16 = vpack.c.bf16 %v327_v13, %v325_v12  ;;  %v348_v17 = vpack.c.bf16 %v328_v15, %v326_v14  ;;  %v321_v18 = vld [vmem:[%s1488_s25 + $0x80] sm:$0xff]  ;;  %v323_v19 = vld [vmem:[%s1488_s25 + $0x90] sm:$0xff]  ;;  %v322_v20 = vld [vmem:[%s1488_s25 + $0x88] sm:$0xff] }
  0x14   : > { %v324_v21 = vld [vmem:[%s1488_s25 + $0x98] sm:$0xff]  ;;  %v345_v22 = vpack.c.bf16 %v323_v19, %v321_v18  ;;  %v317_v24 = vld [vmem:[%s1488_s25 + $0x60] sm:$0xff]  ;;  %v319_v25 = vld [vmem:[%s1488_s25 + $0x70] sm:$0xff] }
  0x15   : > { %v346_v23 = vpack.c.bf16 %v324_v21, %v322_v20  ;;  %v318_v26 = vld [vmem:[%s1488_s25 + $0x68] sm:$0xff]  ;;  %v320_v27 = vld [vmem:[%s1488_s25 + $0x78] sm:$0xff]  ;;  %v343_v28 = vpack.c.bf16 %v319_v25, %v317_v24  ;;  %v313_v30 = vld [vmem:[%s1488_s25 + $0x40] sm:$0xff] }
  0x16   : > { %402 = vmatpush.bf16.msra.mxu0 %v349_v10  ;;  %v344_v29 = vpack.c.bf16 %v320_v27, %v318_v26  ;;  %v315_v31 = vld [vmem:[%s1488_s25 + $0x50] sm:$0xff]  ;;  %v314_v32 = vld [vmem:[%s1488_s25 + $0x48] sm:$0xff]  ;;  %v316_v33 = vld [vmem:[%s1488_s25 + $0x58] sm:$0xff] }
  0x17   : > { %441 = vmatpush.bf16.msra.mxu1 %v350_v11  ;;  %v341_v34 = vpack.c.bf16 %v315_v31, %v313_v30  ;;  %v342_v35 = vpack.c.bf16 %v316_v33, %v314_v32  ;;  %v309_v36 = vld [vmem:[%s1488_s25 + $0x20] sm:$0xff]  ;;  %v311_v37 = vld [vmem:[%s1488_s25 + $0x30] sm:$0xff]  ;;  %v310_v38 = vld [vmem:[%s1488_s25 + $0x28] sm:$0xff] }
  0x18   : > { %v312_v39 = vld [vmem:[%s1488_s25 + $0x38] sm:$0xff]  ;;  %v339_v40 = vpack.c.bf16 %v311_v37, %v309_v36  ;;  %v305_v42 = vld [vmem:[%s1488_s25] sm:$0xff]  ;;  %v307_v43 = vld [vmem:[%s1488_s25 + $0x10] sm:$0xff] }
  0x19   : > { %v340_v41 = vpack.c.bf16 %v312_v39, %v310_v38  ;;  %v306_v44 = vld [vmem:[%s1488_s25 + $0x8] sm:$0xff]  ;;  %v308_v45 = vld [vmem:[%s1488_s25 + $0x18] sm:$0xff]  ;;  %v337_v46 = vpack.c.bf16 %v307_v43, %v305_v42  ;;  %v1280_v38 = vld [vmem:[%s1839_s2 + $0x70] sm:$0xff] }
  0x1a   : > { %403 = vmatpush.bf16.msra.mxu0 %v347_v16  ;;  %v338_v47 = vpack.c.bf16 %v308_v45, %v306_v44  ;;  %v1273_v31 = vld [vmem:[%s1839_s2 + $0x38] sm:$0xff] }
  0x1b   : > { %442 = vmatpush.bf16.msra.mxu1 %v348_v17  ;;  %v1281_v32 = vld [vmem:[%s1839_s2 + $0x78] sm:$0xff]  ;;  %883 = vmatpush.bf16.msra.mxu2 %v1273_v31 }
  0x1c   : > { %917 = vmatpush.bf16.msra.mxu3 %v1281_v32 }
  0x1e   : > { %404 = vmatpush.bf16.msra.mxu0 %v345_v22 }
  0x1f   : > { %443 = vmatpush.bf16.msra.mxu1 %v346_v23 }
  0x20   : > { %918 = vmatpush.bf16.msra.mxu3 %v1280_v38  ;;  %v1266_v38 = vld [vmem:[%s1839_s2] sm:$0xff] }
  0x22   : > { %405 = vmatpush.bf16.msra.mxu0 %v343_v28 }
  0x23   : > { %444 = vmatpush.bf16.msra.mxu1 %v344_v29 }
  0x26   : > { %406 = vmatpush.bf16.msra.mxu0 %v341_v34 }
  0x27   : > { %445 = vmatpush.bf16.msra.mxu1 %v342_v35  ;;  %v1272_v35 = vld [vmem:[%s1839_s2 + $0x30] sm:$0xff] }
  0x28   : > { %884 = vmatpush.bf16.msra.mxu2 %v1272_v35  ;;  %v1275_v35 = vld [vmem:[%s1839_s2 + $0x48] sm:$0xff] }
  0x2a   : > { %407 = vmatpush.bf16.msra.mxu0 %v339_v40 }
  0x2b   : > { %446 = vmatpush.bf16.msra.mxu1 %v340_v41  ;;  %v1271_v41 = vld [vmem:[%s1839_s2 + $0x28] sm:$0xff] }
  0x2c   : > { %885 = vmatpush.bf16.msra.mxu2 %v1271_v41 }
  0x2e   : > { %408 = vmatpush.bf16.msra.mxu0 %v337_v46  ;;  %v1279_v46 = vld [vmem:[%s1839_s2 + $0x68] sm:$0xff] }
  0x2f   : > { %447 = vmatpush.bf16.msra.mxu1 %v338_v47  ;;  %919 = vmatpush.bf16.msra.mxu3 %v1279_v46 }
  0x31   : > { %409 = vmatmul.bf16.vlgmr.msra.gmra.mxu0 %v1260_v48 }
  0x32   : > { %448 = vmatmul.bf16.vlgmr.msra.gmra.mxu1 %v1260_v48 }
  0x41   : > { %414 = vmatmul.bf16.gmra.mxu0 %v1261_v49 }
  0x42   : > { %453 = vmatmul.bf16.gmra.mxu1 %v1261_v49 }
  0x51   : > { %419 = vmatmul.bf16.gmra.mxu0 %v1262_v50 }
  0x52   : > { %458 = vmatmul.bf16.gmra.mxu1 %v1262_v50 }
  0x61   : > { %424 = vmatmul.bf16.gmra.mxu0 %v1263_v51 }
  0x62   : > { %463 = vmatmul.bf16.gmra.mxu1 %v1263_v51 }
  0x71   : > { %429 = vmatmul.bf16.gmra.mxu0 %v1264_v52 }
  0x72   : > { %468 = vmatmul.bf16.gmra.mxu1 %v1264_v52 }
  0x81   : > { %434 = vmatmul.bf16.gmra.mxu0 %v1265_v53 }
  0x82   : > { %473 = vmatmul.bf16.gmra.mxu1 %v1265_v53  ;;  %v1270_v53 = vld [vmem:[%s1839_s2 + $0x20] sm:$0xff] }
  0x83   : > { %886 = vmatpush.bf16.msra.mxu2 %v1270_v53 }
  0xae   : > { %v410_v54 = vpop.f32.mrf.mxu0 }
  0xaf   : > { %v449_v55 = vpop.f32.mrf.mxu1 }
  0xb0   : > { %v479_v56 = vpack.c.bf16 %v449_v55, %v410_v54 }
  0xb2   : > { %481 = vst [vmem:[%s287_s16] sm:$0xff] %v479_v56 }
  0xb6   : > { %v412_v57 = vpop.f32.mrf.mxu0 }
  0xb7   : > { %v451_v58 = vpop.f32.mrf.mxu1 }
  0xb8   : > { %v480_v59 = vpack.c.bf16 %v451_v58, %v412_v57  ;;  %v1278_v57 = vld [vmem:[%s1839_s2 + $0x60] sm:$0xff] }
  0xb9   : > { %920 = vmatpush.bf16.msra.mxu3 %v1278_v57 }
  0xba   : > { %482 = vst [vmem:[%s287_s16 + $0x8] sm:$0xff] %v480_v59  ;;  %s1810_s16 = scalar_lea.vmem %s1842_s5, %s1259_s13 }
  0xbe   : > { %v415_v60 = vpop.f32.mrf.mxu0 }
  0xbf   : > { %v454_v61 = vpop.f32.mrf.mxu1 }
  0xc0   : > { %v1308_v62 = vpack.i.bf16 %v454_v61, %v415_v60 }
  0xc2   : > { %1309 = vrot.lane.b32.xlu0 %v1308_v62, %s1432_s17 }
  0xc6   : > { %v417_v63 = vpop.f32.mrf.mxu0 }
  0xc7   : > { %v456_v0 = vpop.f32.mrf.mxu1 }
  0xc8   : > { %v1313_v1 = vpack.i.bf16 %v456_v0, %v417_v63 }
  0xca   : > { %1314 = vrot.lane.b32.xlu0 %v1313_v1, %s1432_s17 }
  0xce   : > { %v1546_v2 = vpop.f32.mrf.mxu0 }
  0xcf   : > { %v1548_v3 = vpop.f32.mrf.mxu1 }
  0xd0   : > { %v1318_v4 = vpack.i.bf16 %v1548_v3, %v1546_v2 }
  0xd2   : > { %1319 = vrot.lane.b32.xlu1 %v1318_v4, %s1432_s17 }
  0xd6   : > { %v1553_v5 = vpop.f32.mrf.mxu0 }
  0xd7   : > { %v1555_v6 = vpop.f32.mrf.mxu1 }
  0xd8   : > { %v1323_v7 = vpack.i.bf16 %v1555_v6, %v1553_v5 }
  0xda   : > { %1324 = vrot.lane.b32.xlu1 %v1323_v7, %s1432_s17 }
  0xde   : > { %v1560_v8 = vpop.f32.mrf.mxu0 }
  0xdf   : > { %v1562_v9 = vpop.f32.mrf.mxu1 }
  0xe0   : > { %v1328_v10 = vpack.i.bf16 %v1562_v9, %v1560_v8 }
  0xe2   : > { %1329 = vrot.lane.b32.xlu2 %v1328_v10, %s1432_s17 }
  0xe6   : > { %v1567_v11 = vpop.f32.mrf.mxu0 }
  0xe7   : > { %v1569_v12 = vpop.f32.mrf.mxu1 }
  0xe8   : > { %v1333_v13 = vpack.i.bf16 %v1569_v12, %v1567_v11 }
  0xea   : > { %1334 = vrot.lane.b32.xlu2 %v1333_v13, %s1432_s17 }
  0xee   : > { %v1574_v14 = vpop.f32.mrf.mxu0 }
  0xef   : > { %v1576_v15 = vpop.f32.mrf.mxu1 }
  0xf0   : > { %v1348_v16 = vpack.i.bf16 %v1576_v15, %v1574_v14 }
  0xf2   : > { %1349 = vrot.lane.b32.xlu2 %v1348_v16, %s1432_s17 }
  0xf6   : > { %v1589_v25 = vpop.f32.mrf.mxu0 }
  0xf7   : > { %v1591_v26 = vpop.f32.mrf.mxu1 }
  0xf8   : > { %v1353_v39 = vpack.i.bf16 %v1591_v26, %v1589_v25 }
  0xfe   : > { %v1626_v47 = vpop.f32.mrf.mxu0 }
  0xff   : > { %v1628_v48 = vpop.f32.mrf.mxu1 }
 0x100   : > { %v1368_v54 = vpack.i.bf16 %v1628_v48, %v1626_v47 }
 0x106   : > { %v1662_v13 = vpop.f32.mrf.mxu0 }
 0x107   : > { %v1664_v16 = vpop.f32.mrf.mxu1 }
 0x134   : > { %v1310_v17 = vpop.permute.xlu0 %1309 }
 0x135   : > { %v1312_v18 = vunpack.i.h.bf16 %v1310_v17  ;;  %v1311_v19 = vunpack.i.l.bf16 %v1310_v17 }
 0x137   : > { %v544_v20 = vsel %vm543_vm0, %v1311_v19, %v1312_v18  ;;  %v584_v21 = vsel %vm543_vm0, %v1312_v18, %v1311_v19 }
 0x138   : > { %v1583_v22 = vmax.f32 %v415_v60, %v544_v20  ;;  %v1585_v23 = vmax.f32 %v454_v61, %v584_v21 }
 0x13a   : > { %v1338_v24 = vpack.i.bf16 %v1585_v23, %v1583_v22 }
 0x13c   : > { %1339 = vrot.lane.b32.xlu0 %v1338_v24, %s1433_s22  ;;  %v1315_v27 = vpop.permute.xlu0 %1314  ;;  %v1594_v28 = vpop.permute.xlu2 %1329 }
 0x13d   : > { %v1317_v29 = vunpack.i.h.bf16 %v1315_v27  ;;  %v1316_v30 = vunpack.i.l.bf16 %v1315_v27  ;;  %v1331_v4 = vunpack.i.l.bf16 %v1594_v28  ;;  %v1373_v27 = vpack.i.bf16 %v1664_v16, %v1662_v13 }
 0x13f   : > { %v545_v33 = vsel %vm543_vm0, %v1316_v30, %v1317_v29  ;;  %v585_v34 = vsel %vm543_vm0, %v1317_v29, %v1316_v30 }
 0x140   : > { %v1607_v36 = vmax.f32 %v417_v63, %v545_v33  ;;  %v1609_v37 = vmax.f32 %v456_v0, %v585_v34  ;;  %v1267_v34 = vld [vmem:[%s1839_s2 + $0x8] sm:$0xff] }
 0x142   : > { %v1343_v40 = vpack.i.bf16 %v1609_v37, %v1607_v36 }
 0x144   : > { %v1320_v42 = vpop.permute.xlu1 %1319  ;;  %1344 = vrot.lane.b32.xlu1 %v1343_v40, %s1433_s22  ;;  %v1335_v43 = vpop.permute.xlu2 %1334  ;;  %1354 = vrot.lane.b32.xlu0 %v1353_v39, %s1432_s17  ;;  %v1274_v39 = vld [vmem:[%s1839_s2 + $0x40] sm:$0xff] }
 0x145   : > { %v1322_v44 = vunpack.i.h.bf16 %v1320_v42  ;;  %v1321_v45 = vunpack.i.l.bf16 %v1320_v42  ;;  %v1337_v51 = vunpack.i.h.bf16 %v1335_v43  ;;  %v1336_v52 = vunpack.i.l.bf16 %v1335_v43 }
 0x147   : > { %v546_v49 = vsel %vm543_vm0, %v1321_v45, %v1322_v44  ;;  %v586_v50 = vsel %vm543_vm0, %v1322_v44, %v1321_v45  ;;  %v549_v59 = vsel %vm543_vm0, %v1336_v52, %v1337_v51  ;;  %v589_v60 = vsel %vm543_vm0, %v1337_v51, %v1336_v52 }
 0x148   : > { %v1638_v55 = vmax.f32 %v1546_v2, %v546_v49  ;;  %v1641_v56 = vmax.f32 %v1548_v3, %v586_v50  ;;  %v1653_v1 = vmax.f32 %v1567_v11, %v549_v59  ;;  %v1656_v2 = vmax.f32 %v1569_v12, %v589_v60 }
 0x149   : > { %v1332_v3 = vunpack.i.h.bf16 %v1594_v28 }
 0x14a   : > { %v1358_v58 = vpack.i.bf16 %v1641_v56, %v1638_v55  ;;  %v1383_v20 = vpack.i.bf16 %v1656_v2, %v1653_v1 }
 0x14b   : > { %v548_v21 = vsel %vm543_vm0, %v1331_v4, %v1332_v3  ;;  %v588_v24 = vsel %vm543_vm0, %v1332_v3, %v1331_v4 }
 0x14c   : > { %1359 = vrot.lane.b32.xlu1 %v1358_v58, %s1433_s22  ;;  %v1325_v61 = vpop.permute.xlu1 %1324  ;;  %1369 = vrot.lane.b32.xlu0 %v1368_v54, %s1432_s17  ;;  %v1350_v0 = vpop.permute.xlu2 %1349  ;;  %v1689_v29 = vmax.f32 %v1562_v9, %v588_v24  ;;  %v1277_v9 = vld [vmem:[%s1839_s2 + $0x58] sm:$0xff] }
 0x14d   : > { %v1327_v62 = vunpack.i.h.bf16 %v1325_v61  ;;  %v1326_v63 = vunpack.i.l.bf16 %v1325_v61  ;;  %v1352_v17 = vunpack.i.h.bf16 %v1350_v0  ;;  %v1351_v18 = vunpack.i.l.bf16 %v1350_v0  ;;  %921 = vmatpush.bf16.msra.mxu3 %v1277_v9 }
 0x14f   : > { %v547_v7 = vsel %vm543_vm0, %v1326_v63, %v1327_v62  ;;  %v587_v10 = vsel %vm543_vm0, %v1327_v62, %v1326_v63  ;;  %v550_v28 = vsel %vm543_vm0, %v1351_v18, %v1352_v17 }
 0x150   : > { %v1667_v11 = vmax.f32 %v1553_v5, %v547_v7  ;;  %v1670_v12 = vmax.f32 %v1555_v6, %v587_v10  ;;  %v590_v5 = vsel %vm543_vm0, %v1352_v17, %v1351_v18  ;;  %v1686_v6 = vmax.f32 %v1560_v8, %v548_v21  ;;  %v1269_v8 = vld [vmem:[%s1839_s2 + $0x18] sm:$0xff] }
 0x151   : > { %v1692_v30 = vmax.f32 %v1574_v14, %v550_v28  ;;  %v1695_v31 = vmax.f32 %v1576_v15, %v590_v5  ;;  %887 = vmatpush.bf16.msra.mxu2 %v1269_v8  ;;  %v1268_v14 = vld [vmem:[%s1839_s2 + $0x10] sm:$0xff] }
 0x152   : > { %v1363_v19 = vpack.i.bf16 %v1670_v12, %v1667_v11  ;;  %v1378_v32 = vpack.i.bf16 %v1689_v29, %v1686_v6  ;;  %v1276_v15 = vld [vmem:[%s1839_s2 + $0x50] sm:$0xff] }
 0x153   : > { %v1388_v33 = vpack.i.bf16 %v1695_v31, %v1692_v30  ;;  %922 = vmatpush.bf16.msra.mxu3 %v1276_v15 }
 0x154   : > { %1364 = vrot.lane.b32.xlu2 %v1363_v19, %s1433_s22  ;;  %1384 = vrot.lane.b32.xlu0 %v1383_v20, %s1433_s22 }
 0x155   : > { %1374 = vrot.lane.b32.xlu1 %v1373_v27, %s1432_s17  ;;  %888 = vmatpush.bf16.msra.mxu2 %v1268_v14 }
 0x157   : > { %923 = vmatpush.bf16.msra.mxu3 %v1275_v35 }
 0x159   : > { %889 = vmatpush.bf16.msra.mxu2 %v1267_v34 }
 0x15b   : > { %924 = vmatpush.bf16.msra.mxu3 %v1274_v39 }
 0x15c   : > { %1379 = vrot.lane.b32.xlu2 %v1378_v32, %s1433_s22 }
 0x15d   : > { %1389 = vrot.lane.b32.xlu1 %v1388_v33, %s1433_s22  ;;  %890 = vmatpush.bf16.msra.mxu2 %v1266_v38 }
 0x1ae   : > { %v1340_v40 = vpop.permute.xlu0 %1339 }
 0x1af   : > { %v1342_v41 = vunpack.i.h.bf16 %v1340_v40  ;;  %v1341_v42 = vunpack.i.l.bf16 %v1340_v40 }
 0x1b1   : > { %v675_v44 = vsel %vm674_vm1, %v1341_v42, %v1342_v41  ;;  %v715_v45 = vsel %vm674_vm1, %v1342_v41, %v1341_v42 }
 0x1b2   : > { %v725_v54 = vmax.f32 %v1583_v22, %v675_v44  ;;  %v726_v58 = vmax.f32 %v1585_v23, %v715_v45 }
 0x1b6   : > { %v1345_v43 = vpop.permute.xlu1 %1344  ;;  %v1355_v50 = vpop.permute.xlu0 %1354 }
 0x1b7   : > { %v1347_v46 = vunpack.i.h.bf16 %v1345_v43  ;;  %v1346_v49 = vunpack.i.l.bf16 %v1345_v43  ;;  %v1357_v51 = vunpack.i.h.bf16 %v1355_v50  ;;  %v1356_v52 = vunpack.i.l.bf16 %v1355_v50 }
 0x1b9   : > { %v676_v53 = vsel %vm674_vm1, %v1346_v49, %v1347_v46  ;;  %v716_v57 = vsel %vm674_vm1, %v1347_v46, %v1346_v49  ;;  %v551_v59 = vsel %vm543_vm0, %v1356_v52, %v1357_v51  ;;  %v591_v60 = vsel %vm543_vm0, %v1357_v51, %v1356_v52 }
 0x1ba   : > { %v727_v61 = vmax.f32 %v1607_v36, %v676_v53  ;;  %v728_v62 = vmax.f32 %v1609_v37, %v716_v57  ;;  %v1738_v63 = vmax.f32 %v1589_v25, %v551_v59  ;;  %v1741_v0 = vmax.f32 %v1591_v26, %v591_v60  ;;  %v1365_v36 = vpop.permute.xlu2 %1364 }
 0x1bb   : > { %v1367_v19 = vunpack.i.h.bf16 %v1365_v36  ;;  %v1366_v20 = vunpack.i.l.bf16 %v1365_v36 }
 0x1bc   : > { %v745_v3 = vpack.c.bf16 %v727_v61, %v725_v54  ;;  %v746_v22 = vpack.c.bf16 %v728_v62, %v726_v58  ;;  %v1393_v4 = vpack.i.bf16 %v1741_v0, %v1738_v63 }
 0x1bd   : > { %v678_v33 = vsel %vm674_vm1, %v1366_v20, %v1367_v19  ;;  %v718_v8 = vsel %vm674_vm1, %v1367_v19, %v1366_v20 }
 0x1be   : > { %v1360_v23 = vpop.permute.xlu1 %1359  ;;  %891 = vmatmul.bf16.vlgmr.msra.gmra.mxu2 %v745_v3  ;;  %925 = vmatmul.bf16.vlgmr.msra.gmra.mxu3 %v746_v22  ;;  %v1370_v7 = vpop.permute.xlu0 %1369  ;;  %v731_v35 = vmax.f32 %v1667_v11, %v678_v33  ;;  %v732_v38 = vmax.f32 %v1670_v12, %v718_v8 }
 0x1bf   : > { %1394 = vrot.lane.b32.xlu2 %v1393_v4, %s1433_s22  ;;  %v1372_v10 = vunpack.i.h.bf16 %v1370_v7  ;;  %v1371_v37 = vunpack.i.l.bf16 %v1370_v7  ;;  %v1362_v17 = vunpack.i.h.bf16 %v1360_v23  ;;  %v1361_v25 = vunpack.i.l.bf16 %v1360_v23 }
 0x1c1   : > { %v552_v18 = vsel %vm543_vm0, %v1371_v37, %v1372_v10  ;;  %v592_v26 = vsel %vm543_vm0, %v1372_v10, %v1371_v37  ;;  %v677_v28 = vsel %vm674_vm1, %v1361_v25, %v1362_v17  ;;  %v717_v5 = vsel %vm674_vm1, %v1362_v17, %v1361_v25 }
 0x1c2   : > { %v1749_v21 = vmax.f32 %v1626_v47, %v552_v18  ;;  %v1752_v24 = vmax.f32 %v1628_v48, %v592_v26  ;;  %v729_v14 = vmax.f32 %v1638_v55, %v677_v28  ;;  %v730_v48 = vmax.f32 %v1641_v56, %v717_v5  ;;  %v1380_v43 = vpop.permute.xlu2 %1379 }
 0x1c3   : > { %v1382_v12 = vunpack.i.h.bf16 %v1380_v43  ;;  %v1381_v45 = vunpack.i.l.bf16 %v1380_v43 }
 0x1c4   : > { %v1398_v27 = vpack.i.bf16 %v1752_v24, %v1749_v21  ;;  %v747_v41 = vpack.c.bf16 %v731_v35, %v729_v14  ;;  %v748_v42 = vpack.c.bf16 %v732_v38, %v730_v48 }
 0x1c5   : > { %v679_v46 = vsel %vm674_vm1, %v1381_v45, %v1382_v12  ;;  %v719_v49 = vsel %vm674_vm1, %v1382_v12, %v1381_v45 }
 0x1c6   : > { %1399 = vrot.lane.b32.xlu0 %v1398_v27, %s1433_s22  ;;  %v1385_v56 = vpop.permute.xlu0 %1384  ;;  %v733_v52 = vmax.f32 %v1686_v6, %v679_v46  ;;  %v734_v53 = vmax.f32 %v1689_v29, %v719_v49 }
 0x1c7   : > { %v1375_v32 = vpop.permute.xlu1 %1374  ;;  %v1387_v11 = vunpack.i.h.bf16 %v1385_v56  ;;  %v1386_v44 = vunpack.i.l.bf16 %v1385_v56 }
 0x1c8   : > { %v1377_v9 = vunpack.i.h.bf16 %v1375_v32  ;;  %v1376_v47 = vunpack.i.l.bf16 %v1375_v32 }
 0x1ca   : > { %v553_v15 = vsel %vm543_vm0, %v1376_v47, %v1377_v9  ;;  %v593_v34 = vsel %vm543_vm0, %v1377_v9, %v1376_v47 }
 0x1cb   : > { %v1768_v39 = vmax.f32 %v1662_v13, %v553_v15  ;;  %v1771_v40 = vmax.f32 %v1664_v16, %v593_v34  ;;  %v680_v13 = vsel %vm674_vm1, %v1386_v44, %v1387_v11  ;;  %v720_v16 = vsel %vm674_vm1, %v1387_v11, %v1386_v44 }
 0x1cc   : > { %v735_v50 = vmax.f32 %v1653_v1, %v680_v13  ;;  %v736_v51 = vmax.f32 %v1656_v2, %v720_v16 }
 0x1cd   : > { %v1403_v55 = vpack.i.bf16 %v1771_v40, %v1768_v39 }
 0x1ce   : > { %896 = vmatmul.bf16.gmra.mxu2 %v747_v41  ;;  %930 = vmatmul.bf16.gmra.mxu3 %v748_v42  ;;  %v749_v54 = vpack.c.bf16 %v735_v50, %v733_v52  ;;  %v750_v57 = vpack.c.bf16 %v736_v51, %v734_v53 }
 0x1cf   : > { %1404 = vrot.lane.b32.xlu1 %v1403_v55, %s1433_s22  ;;  %v1390_v58 = vpop.permute.xlu1 %1389  ;;  %s1258_s22 = sshll.u32 %s1848_s18, 3 }
 0x1d0   : > { %v1392_v59 = vunpack.i.h.bf16 %v1390_v58  ;;  %v1391_v60 = vunpack.i.l.bf16 %v1390_v58  ;;  %s296_s12 = scalar_lea.vmem %s1841_s4, %s1258_s22 }
 0x1d2   : > { %v681_v22 = vsel %vm674_vm1, %v1391_v60, %v1392_v59  ;;  %v721_v1 = vsel %vm674_vm1, %v1392_v59, %v1391_v60 }
 0x1d3   : > { %v737_v29 = vmax.f32 %v1692_v30, %v681_v22  ;;  %v738_v23 = vmax.f32 %v1695_v31, %v721_v1 }
 0x1de   : > { %901 = vmatmul.bf16.gmra.mxu2 %v749_v54  ;;  %935 = vmatmul.bf16.gmra.mxu3 %v750_v57 }
 0x219   : > { %v1395_v61 = vpop.permute.xlu2 %1394 }
 0x21a   : > { %v1397_v62 = vunpack.i.h.bf16 %v1395_v61  ;;  %v1396_v3 = vunpack.i.l.bf16 %v1395_v61 }
 0x21c   : > { %v682_v2 = vsel %vm674_vm1, %v1396_v3, %v1397_v62  ;;  %v722_v6 = vsel %vm674_vm1, %v1397_v62, %v1396_v3 }
 0x21d   : > { %v739_v4 = vmax.f32 %v1738_v63, %v682_v2  ;;  %v740_v7 = vmax.f32 %v1741_v0, %v722_v6 }
 0x21f   : > { %v751_v36 = vpack.c.bf16 %v739_v4, %v737_v29  ;;  %v752_v10 = vpack.c.bf16 %v740_v7, %v738_v23 }
 0x221   : > { %906 = vmatmul.bf16.gmra.mxu2 %v751_v36  ;;  %940 = vmatmul.bf16.gmra.mxu3 %v752_v10 }
 0x238   : > { %v1400_v37 = vpop.permute.xlu0 %1399 }
 0x239   : > { %v1402_v17 = vunpack.i.h.bf16 %v1400_v37  ;;  %v1401_v25 = vunpack.i.l.bf16 %v1400_v37 }
 0x23b   : > { %v683_v19 = vsel %vm674_vm1, %v1401_v25, %v1402_v17  ;;  %v723_v63 = vsel %vm674_vm1, %v1402_v17, %v1401_v25 }
 0x23c   : > { %v741_v28 = vmax.f32 %v1749_v21, %v683_v19  ;;  %v742_v8 = vmax.f32 %v1752_v24, %v723_v63 }
 0x241   : > { %v1405_v18 = vpop.permute.xlu1 %1404  ;;  %v892_v26 = vpop.f32.mrf.mxu2 }
 0x242   : > { %v1407_v20 = vunpack.i.h.bf16 %v1405_v18  ;;  %v1406_v30 = vunpack.i.l.bf16 %v1405_v18  ;;  %v926_v27 = vpop.f32.mrf.mxu3 }
 0x243   : > { %v927_v31 = vadd.f32 %v926_v27, %v892_v26 }
 0x244   : > { %v684_v0 = vsel %vm674_vm1, %v1406_v30, %v1407_v20  ;;  %v724_v5 = vsel %vm674_vm1, %v1407_v20, %v1406_v30 }
 0x245   : > { %v951_v32 = vpack.c.bf16 %v927_v31, %v927_v31  ;;  %v743_v33 = vmax.f32 %v1768_v39, %v684_v0  ;;  %v744_v9 = vmax.f32 %v1771_v40, %v724_v5 }
 0x247   : > { %954 = vst.msk [vmem:[%s296_s12] sm:$0xf] %vm953_vm2, %v951_v32  ;;  %v753_v47 = vpack.c.bf16 %v743_v33, %v741_v28  ;;  %v754_v14 = vpack.c.bf16 %v744_v9, %v742_v8 }
 0x249   : > { %911 = vmatmul.bf16.gmra.mxu2 %v753_v47  ;;  %945 = vmatmul.bf16.gmra.mxu3 %v754_v14  ;;  %v894_v48 = vpop.f32.mrf.mxu2 }
 0x24a   : > { %v928_v15 = vpop.f32.mrf.mxu3 }
 0x24b   : > { %v929_v34 = vadd.f32 %v928_v15, %v894_v48 }
 0x24d   : > { %v952_v21 = vpack.c.bf16 %v929_v34, %v929_v34 }
 0x24f   : > { %955 = vst.msk [vmem:[%s296_s12 + $0x4] sm:$0xf] %vm953_vm2, %v952_v21 }
 0x251   : > { %v897_v35 = vpop.f32.mrf.mxu2 }
 0x252   : > { %v931_v38 = vpop.f32.mrf.mxu3 }
 0x253   : > { %v932_v39 = vadd.f32 %v931_v38, %v897_v35 }
 0x255   : > { %v956_v24 = vpack.c.bf16 %v932_v39, %v932_v39 }
 0x257   : > { %964 = vst.msk [vmem:[%s1810_s16] sm:$0xf] %vm953_vm2, %v956_v24 }
 0x259   : > { %v899_v40 = vpop.f32.mrf.mxu2 }
 0x25a   : > { %v933_v41 = vpop.f32.mrf.mxu3 }
 0x25b   : > { %v934_v42 = vadd.f32 %v933_v41, %v899_v40 }
 0x25d   : > { %v957_v55 = vpack.c.bf16 %v934_v42, %v934_v42 }
 0x25f   : > { %965 = vst.msk [vmem:[%s1810_s16 + $0x4] sm:$0xf] %vm953_vm2, %v957_v55 }
 0x261   : > { %v902_v56 = vpop.f32.mrf.mxu2 }
 0x262   : > { %v936_v43 = vpop.f32.mrf.mxu3 }
 0x263   : > { %v937_v11 = vadd.f32 %v936_v43, %v902_v56 }
 0x265   : > { %v958_v44 = vpack.c.bf16 %v937_v11, %v937_v11 }
 0x267   : > { %966 = vst.msk [vmem:[%s1810_s16 + $0x8] sm:$0xf] %vm953_vm2, %v958_v44 }
 0x269   : > { %v904_v12 = vpop.f32.mrf.mxu2 }
 0x26a   : > { %v938_v45 = vpop.f32.mrf.mxu3 }
 0x26b   : > { %v939_v13 = vadd.f32 %v938_v45, %v904_v12 }
 0x26d   : > { %v959_v16 = vpack.c.bf16 %v939_v13, %v939_v13 }
 0x26f   : > { %967 = vst.msk [vmem:[%s1810_s16 + $0xc] sm:$0xf] %vm953_vm2, %v959_v16 }
 0x2a4   : > { %v907_v46 = vpop.f32.mrf.mxu2  ;;  %v941_v49 = vpop.f32.mrf.mxu3 }
 0x2a5   : > { %v942_v50 = vadd.f32 %v941_v49, %v907_v46 }
 0x2a7   : > { %v960_v51 = vpack.c.bf16 %v942_v50, %v942_v50 }
 0x2a9   : > { %968 = vst.msk [vmem:[%s1810_s16 + $0x10] sm:$0xf] %vm953_vm2, %v960_v51 }
 0x2ac   : > { %v909_v52 = vpop.f32.mrf.mxu2  ;;  %v943_v53 = vpop.f32.mrf.mxu3 }
 0x2ad   : > { %v944_v54 = vadd.f32 %v943_v53, %v909_v52 }
 0x2af   : > { %v961_v57 = vpack.c.bf16 %v944_v54, %v944_v54 }
 0x2b1   : > { %969 = vst.msk [vmem:[%s1810_s16 + $0x14] sm:$0xf] %vm953_vm2, %v961_v57 }
 0x2cc   : > { %v912_v58 = vpop.f32.mrf.mxu2  ;;  %v946_v59 = vpop.f32.mrf.mxu3 }
 0x2cd   : > { %v947_v60 = vadd.f32 %v946_v59, %v912_v58 }
 0x2cf   : > { %v962_v61 = vpack.c.bf16 %v947_v60, %v947_v60 }
 0x2d1   : > { %970 = vst.msk [vmem:[%s1810_s16 + $0x18] sm:$0xf] %vm953_vm2, %v962_v61 }
 0x2d4   : > { %v914_v62 = vpop.f32.mrf.mxu2  ;;  %v948_v3 = vpop.f32.mrf.mxu3 }
 0x2d5   : > { %v949_v22 = vadd.f32 %v948_v3, %v914_v62 }
 0x2d7   : > { %v963_v1 = vpack.c.bf16 %v949_v22, %v949_v22 }
 0x2d9   : > { %971 = vst.msk [vmem:[%s1810_s16 + $0x1c] sm:$0xf] %vm953_vm2, %v963_v1 }
 0x2da PF: > { %s16_s20 = sadd.s32 1, %s1430_s20   ;;  %s1843_s18 = smov %s1426_s19 }
 0x2db   : > { %p13_p5 = scmp.ge.s32.totalorder %s16_s20, 4   ;;  %s1844_s19 = smov %s1846_s21 }
 0x2dd   :  { %15 = sbr.rel (!%p13_p5) target bundleno = 2 (0x2), region = 86 }

// kernel: attention_forward.1
= control target key start
LH: loop header
LB: loop body
LE: loop exit
PB: predicated region body
PF: predicated region fallthrough
CT: control target
= control target key end

     0   :  { %s1325_s18 = smov 0   ;;  %s1327_s19 = smov 0   ;;  %s1557_s0 = inlined_call_operand.vmem [shape: bf16[2,16,256], index: 0, kind: input, shape index: {}]   ;;  %s1558_s1 = inlined_call_operand.vmem [shape: bf16[2,16,64], index: 1, kind: input, shape index: {}]   ;;  %s1559_s2 = inlined_call_operand.vmem [shape: bf16[2,64,64], index: 2, kind: input, shape index: {}]   ;;  %s1560_s3 = inlined_call_operand.vmem [shape: f32[2,128,256], index: 3, kind: input, shape index: {}]   ;;  %s1561_s4 = inlined_call_operand.vmem [shape: bf16[128,64], index: 4, kind: input, shape index: {}]   ;;  %s1562_s5 = inlined_call_operand.vmem [shape: f32[2,128,256], index: 5, kind: output, shape index: {}]  }
   0x1   :  { %s1329_s20 = smov 0   ;;  %s1331_s21 = smov 0  }
   0x2   :  { %s1333_s22 = smov 0   ;;  %s1335_s23 = smov 0  }
   0x3   :  { %s1337_s24 = smov 0  }
   0x4 LB: > { %s24_s25 = sadd.s32 1, %s1285_s22  ;;  %s27_s26 = sadd.s32 1, %s1289_s23  ;;  %s1293_s24 = sphi %s1337_s24, %s15_s24   ;;  %s1289_s23 = sphi %s1335_s23, %s1570_s23   ;;  %s1285_s22 = sphi %s1333_s22, %s1569_s22   ;;  %s1281_s21 = sphi %s1331_s21, %s1568_s21   ;;  %s1277_s20 = sphi %s1329_s20, %s1567_s20   ;;  %s1273_s19 = sphi %s1327_s19, %s1566_s19   ;;  %s1269_s18 = sphi %s1325_s18, %s1565_s18  }
   0x5   : > { %p25_p0 = scmp.ge.s32.totalorder %s24_s25, 2  ;;  %s1049_s27 = sadd.s32 4294967295, %s1293_s24  }
   0x6   : > { %p43_p1 = scmp.ne.s32.totalorder %s1273_s19, %s1269_s18  ;;  %p44_p2 = scmp.eq.s32.totalorder %s1293_s24, 0 }
   0x7   : > { %s1572_s25 = smov (%p25_p0, %s24_s25), 0  ;;  %s1574_s26 = smov (!%p25_p0, %s27_s26), %s1289_s23 }
   0x8   : > { %p29_p3 = scmp.ge.s32.totalorder %s1574_s26, 2  ;;  %p176_p4 = scmp.eq.s32.totalorder %s1049_s27, 3 }
   0x9   : > { %s32_s28 = ssub.s32 %s1285_s22, %s1572_s25  ;;  %p1371_p5 = por %p44_p2, %p43_p1 }
   0xa   : > { %s1576_s26 = smov (%p29_p3, %s1574_s26), 0  ;;  %p1377_p6 = por %p176_p4, %p43_p1 }
   0xb   : > { %s31_s6 = ssub.s32 %s1289_s23, %s1576_s26  ;;  %s36_s8 = sadd.s32 1, %s1273_s19 }
   0xc   : > { %s33_s7 = sor.u32 %s32_s28, %s31_s6  ;;  %p1052_p8 = scmp.ge.s32.totalorder %s1293_s24, 4 }
   0xd   : > { %p34_p7 = scmp.eq.s32.totalorder %s33_s7, 0 }
   0xe   : > { %201 = sbr.rel (%p1052_p8) target bundleno = 49 (0x31), region = 20 }
   0xf   : > { %s1385_s9 = scalar_select %p34_p7, %s1273_s19, %s36_s8  }
  0x13   : > { %204 = sbr.rel (!%p1371_p5) target bundleno = 27 (0x1b), region = 24  ;;  %s206_s10 = sand.u32 (%p1371_p5), 1, %s1273_s19  }
  0x14   : > { %s1054_s11 = sshll.u32 (%p1371_p5), %s1289_s23, 2  ;;  %s1053_s12 = sshll.u32 (%p1371_p5), %s206_s10, 3 }
  0x15   : > { %s210_s13 = sadd.s32 (%p1371_p5), %s1285_s22, %s1054_s11  ;;  %s208_s27 = scalar_lea.vmem (%p1371_p5), [#allocation2], %s1053_s12 }
  0x16   : > { %s1055_s14 = sshll.u32 (%p1371_p5), %s210_s13, 2 }
  0x17   : > { %s212_s17 = scalar_lea.vmem (%p1371_p5), %s1557_s0, %s1055_s14 }
  0x18   : > { %v229_v0 = vld [vmem:[%s212_s17] sm:$0xf]  ;;  %v231_v1 = vld [vmem:[%s212_s17 + $0x8] sm:$0xf] }
  0x19   : > { %230 = vst [vmem:[%s208_s27] sm:$0xf] %v229_v0 }
  0x1a   : > { %232 = vst [vmem:[%s208_s27 + $0x4] sm:$0xf] %v231_v1 }
  0x1b PF: > { %276 = sbr.rel (!%p1371_p5) target bundleno = 49 (0x31), region = 73  ;;  %s278_s28 = sand.u32 (%p1371_p5), 1, %s1273_s19  }
  0x1c   : > { %s1057_s6 = sshll.u32 (%p1371_p5), %s1289_s23, 5  ;;  %s1056_s7 = sshll.u32 (%p1371_p5), %s278_s28, 7 }
  0x1d   : > { %s282_s8 = sadd.s32 (%p1371_p5), %s1285_s22, %s1057_s6  ;;  %s280_s29 = scalar_lea.vmem (%p1371_p5), [#allocation3], %s1056_s7 }
  0x1e   : > { %s1058_s10 = sshll.u32 (%p1371_p5), %s282_s8, 3 }
  0x1f   : > { %s1404_s14 = scalar_lea.vmem (%p1371_p5), %s1560_s3, %s1058_s10 }
  0x20   : > { %v343_v2 = vld [vmem:[%s1404_s14] sm:$0xff]  ;;  %v345_v3 = vld [vmem:[%s1404_s14 + $0x10] sm:$0xff] }
  0x21   : > { %v347_v4 = vld [vmem:[%s1404_s14 + $0x20] sm:$0xff]  ;;  %344 = vst [vmem:[%s280_s29] sm:$0xff] %v343_v2  ;;  %v349_v5 = vld [vmem:[%s1404_s14 + $0x30] sm:$0xff] }
  0x22   : > { %346 = vst [vmem:[%s280_s29 + $0x8] sm:$0xff] %v345_v3  ;;  %v351_v6 = vld [vmem:[%s1404_s14 + $0x40] sm:$0xff]  ;;  %v353_v7 = vld [vmem:[%s1404_s14 + $0x50] sm:$0xff] }
  0x23   : > { %348 = vst [vmem:[%s280_s29 + $0x10] sm:$0xff] %v347_v4  ;;  %v355_v8 = vld [vmem:[%s1404_s14 + $0x60] sm:$0xff]  ;;  %v357_v9 = vld [vmem:[%s1404_s14 + $0x70] sm:$0xff] }
  0x24   : > { %350 = vst [vmem:[%s280_s29 + $0x18] sm:$0xff] %v349_v5  ;;  %v359_v10 = vld [vmem:[%s1404_s14 + $0x80] sm:$0xff]  ;;  %v361_v11 = vld [vmem:[%s1404_s14 + $0x90] sm:$0xff] }
  0x25   : > { %352 = vst [vmem:[%s280_s29 + $0x20] sm:$0xff] %v351_v6  ;;  %v363_v12 = vld [vmem:[%s1404_s14 + $0xa0] sm:$0xff]  ;;  %v365_v13 = vld [vmem:[%s1404_s14 + $0xb0] sm:$0xff] }
  0x26   : > { %354 = vst [vmem:[%s280_s29 + $0x28] sm:$0xff] %v353_v7  ;;  %v367_v14 = vld [vmem:[%s1404_s14 + $0xc0] sm:$0xff]  ;;  %v369_v15 = vld [vmem:[%s1404_s14 + $0xd0] sm:$0xff] }
  0x27   : > { %356 = vst [vmem:[%s280_s29 + $0x30] sm:$0xff] %v355_v8  ;;  %v371_v16 = vld [vmem:[%s1404_s14 + $0xe0] sm:$0xff]  ;;  %v373_v17 = vld [vmem:[%s1404_s14 + $0xf0] sm:$0xff] }
  0x28   : > { %358 = vst [vmem:[%s280_s29 + $0x38] sm:$0xff] %v357_v9 }
  0x29   : > { %360 = vst [vmem:[%s280_s29 + $0x40] sm:$0xff] %v359_v10 }
  0x2a   : > { %362 = vst [vmem:[%s280_s29 + $0x48] sm:$0xff] %v361_v11 }
  0x2b   : > { %364 = vst [vmem:[%s280_s29 + $0x50] sm:$0xff] %v363_v12 }
  0x2c   : > { %366 = vst [vmem:[%s280_s29 + $0x58] sm:$0xff] %v365_v13 }
  0x2d   : > { %368 = vst [vmem:[%s280_s29 + $0x60] sm:$0xff] %v367_v14 }
  0x2e   : > { %370 = vst [vmem:[%s280_s29 + $0x68] sm:$0xff] %v369_v15 }
  0x2f   : > { %372 = vst [vmem:[%s280_s29 + $0x70] sm:$0xff] %v371_v16 }
  0x30   : > { %374 = vst [vmem:[%s280_s29 + $0x78] sm:$0xff] %v373_v17 }
  0x31 PF: > { %p1059_p9 = scmp.ge.s32.totalorder %s1293_s24, 1  ;;  %p379_p10 = scmp.lt.s32.totalorder %s1293_s24, 5 }
  0x33   : > { %p380_p11 = pnand %p1059_p9, %p379_p10 }
  0x34   : > { %p433_p12 = scmp.lt.s32.totalorder (!%p380_p11), %s1281_s21, 1  ;;  %s386_s12 = sand.u32 (!%p380_p11), 1, %s1269_s18  }
  0x35   : > { %383 = sbr.rel (%p380_p11) target bundleno = 871 (0x367), region = 111  ;;  %s1060_s15 = sshll.u32 (!%p380_p11), %s386_s12, 3 }
  0x36   : > { %s388_s27 = scalar_lea.vmem (!%p380_p11), [#allocation2], %s1060_s15 }
  0x3a   : > { %s1429_s16 = scalar_select %p433_p12, %s1281_s21, 1  ;;  %v1147_v18 = vld [vmem:[%s388_s27] sm:$0xff]  ;;  %vm476_vm0 = vcmask 130048   ;;  %vm600_vm1 = vcmask 523264  }
  0x3b   : > { %496 = vmatpush.bf16.msra.mxu0 %v1147_v18  ;;  %s1140_s18 = sshll.u32 (%p1377_p6), %s1281_s21, 5 }
  0x3c   : > { %s1144_s17 = sshll.u32 %s1429_s16, 3  ;;  %s1145_s8 = sshll.u32 %s1429_s16, 5 }
  0x3d   : > { %s437_s7 = scalar_lea.vmem %s1558_s1, %s1144_s17  ;;  %s442_s13 = scalar_lea.vmem %s1559_s2, %s1145_s8 }
  0x3e   : > { %v1146_v19 = vld [vmem:[%s437_s7] sm:$0xff]  ;;  %v1149_v17 = vld [vmem:[%s442_s13 + $0x8] sm:$0xff]  ;;  %v1150_v18 = vld [vmem:[%s442_s13 + $0x10] sm:$0xff]  ;;  %s1061_s16 = sshll.u32 %s386_s12, 7  ;;  %s837_s12 = sadd.s32 (%p1377_p6), %s1277_s20, %s1140_s18 }
  0x3f   : > { %454 = vxpose.xlu0.c.b16.start.end [1/1] (short) (narrow) %v1146_v19, 64  ;;  %v1148_v16 = vld [vmem:[%s442_s13] sm:$0xff]  ;;  %v1151_v19 = vld [vmem:[%s442_s13 + $0x18] sm:$0xff]  ;;  %s1477_s17 = scalar_lea.vmem [#allocation3], %s1061_s16  ;;  %s1481_s27 = scalar_lea.vmem [#allocation4], %s1061_s16 }
  0x40   : > { %s1141_s28 = sshll.u32 (%p1377_p6), %s837_s12, 3 }
  0x41   : > { %s839_s30 = scalar_lea.vmem (%p1377_p6), %s1562_s5, %s1141_s28 }
  0xeb   : > { %v462_v20 = vpop.trf.xlu0 }
  0xec   : > { %1075 = vmatmul.msk.bf16.vlgmr.msra.gmra.mxu0 %vm476_vm0, %v462_v20 }
  0xfb   : > { %v463_v21 = vpop.trf.xlu0 }
  0xfc   : > { %1076 = vmatmul.msk.bf16.gmra.mxu0 %vm476_vm0, %v463_v21 }
 0x10b   : > { %v464_v22 = vpop.trf.xlu0 }
 0x10c   : > { %1077 = vmatmul.msk.bf16.gmra.mxu0 %vm476_vm0, %v464_v22 }
 0x11b   : > { %v465_v23 = vpop.trf.xlu0 }
 0x11c   : > { %1078 = vmatmul.msk.bf16.gmra.mxu0 %vm476_vm0, %v465_v23 }
 0x169   : > { %v498_v24 = vpop.f32.mrf.mxu0 }
 0x171   : > { %v500_v25 = vpop.f32.mrf.mxu0 }
 0x179   : > { %v503_v26 = vpop.f32.mrf.mxu0 }
 0x181   : > { %v505_v27 = vpop.f32.mrf.mxu0 }
 0x189   : > { %v508_v28 = vpop.f32.mrf.mxu0 }
 0x18a   : > { %v518_v33 = vmax.f32 %v498_v24, %v508_v28 }
 0x191   : > { %v510_v29 = vpop.f32.mrf.mxu0 }
 0x192   : > { %v519_v31 = vmax.f32 %v500_v25, %v510_v29 }
 0x194   : > { %v522_v36 = vmax.f32 %v518_v33, %v519_v31 }
 0x199   : > { %v513_v30 = vpop.f32.mrf.mxu0 }
 0x19a   : > { %v520_v34 = vmax.f32 %v503_v26, %v513_v30 }
 0x1a1   : > { %v515_v32 = vpop.f32.mrf.mxu0 }
 0x1a2   : > { %v521_v35 = vmax.f32 %v505_v27, %v515_v32 }
 0x1a4   : > { %v523_v37 = vmax.f32 %v520_v34, %v521_v35 }
 0x1a6   : > { %v524_v38 = vmax.f32 %v522_v36, %v523_v37 }
 0x1a8   : > { %v525_v39 = vrot.slane %v524_v38, 4 }
 0x1aa   : > { %v526_v40 = vmax.f32 %v524_v38, %v525_v39 }
 0x1ac   : > { %v527_v41 = vrot.slane %v526_v40, 2 }
 0x1ae   : > { %v528_v42 = vmax.f32 %v526_v40, %v527_v41 }
 0x1b0   : > { %v529_v43 = vrot.slane %v528_v42, 1 }
 0x1b2   : > { %v530_v44 = vmax.f32 %v528_v42, %v529_v43 }
 0x1b4   : > { %v531_v45 = vsub.f32 %v498_v24, %v530_v44  ;;  %v532_v46 = vsub.f32 %v500_v25, %v530_v44  ;;  %v533_v47 = vsub.f32 %v503_v26, %v530_v44  ;;  %v534_v48 = vsub.f32 %v505_v27, %v530_v44 }
 0x1b5   : > { %v535_v49 = vsub.f32 %v508_v28, %v530_v44  ;;  %v537_v50 = vsub.f32 %v513_v30, %v530_v44  ;;  %v538_v53 = vsub.f32 %v515_v32, %v530_v44  ;;  %v536_v56 = vsub.f32 %v510_v29, %v530_v44 }
 0x1b6   : > { %v539_v51 = vmul.f32 1.442695, %v531_v45  ;;  %v541_v52 = vmul.f32 1.442695, %v532_v46  ;;  %v543_v54 = vmul.f32 1.442695, %v533_v47 }
 0x1b7   : > { %v545_v55 = vmul.f32 1.442695, %v534_v48  ;;  %v547_v57 = vmul.f32 1.442695, %v535_v49  ;;  %v551_v58 = vmul.f32 1.442695, %v537_v50 }
 0x1b8   : > { %1221 = vpow2.f32 %v539_v51  ;;  %v553_v59 = vmul.f32 1.442695, %v538_v53  ;;  %v549_v60 = vmul.f32 1.442695, %v536_v56  ;;  %v1152_v56 = vld [vmem:[%s1561_s4] sm:$0xff] }
 0x1b9   : > { %1223 = vpow2.f32 %v541_v52 }
 0x1ba   : > { %1225 = vpow2.f32 %v543_v54 }
 0x1bb   : > { %1227 = vpow2.f32 %v545_v55 }
 0x1bc   : > { %1229 = vpow2.f32 %v547_v57  ;;  %v1156_v57 = vld [vmem:[%s1561_s4 + $0x20] sm:$0xff] }
 0x1bd   : > { %1231 = vpow2.f32 %v551_v58  ;;  %v1153_v58 = vld [vmem:[%s1561_s4 + $0x8] sm:$0xff] }
 0x1be   : > { %v1222_v61 = vpop.eup %1221  ;;  %1233 = vpow2.f32 %v553_v59  ;;  %v1157_v59 = vld [vmem:[%s1561_s4 + $0x28] sm:$0xff] }
 0x1bf   : > { %v1224_v62 = vpop.eup %1223  ;;  %1235 = vpow2.f32 %v549_v60  ;;  %v1154_v60 = vld [vmem:[%s1561_s4 + $0x10] sm:$0xff] }
 0x1c0   : > { %v555_v63 = vadd.f32 %v1224_v62, %v1222_v61  ;;  %v1226_v0 = vpop.eup %1225  ;;  %v576_v15 = vpack.c.bf16 %v1224_v62, %v1222_v61  ;;  %v1158_v61 = vld [vmem:[%s1561_s4 + $0x30] sm:$0xff]  ;;  %v1155_v62 = vld [vmem:[%s1561_s4 + $0x18] sm:$0xff] }
 0x1c1   : > { %v1228_v1 = vpop.eup %1227 }
 0x1c2   : > { %v556_v2 = vadd.f32 %v1226_v0, %v555_v63  ;;  %v1230_v3 = vpop.eup %1229  ;;  %v577_v14 = vpack.c.bf16 %v1228_v1, %v1226_v0  ;;  %v1159_v63 = vld [vmem:[%s1561_s4 + $0x38] sm:$0xff]  ;;  %v684_v0 = vld [vmem:[%s1477_s17] sm:$0xff] }
 0x1c3   : > { %v1232_v4 = vpop.eup %1231 }
 0x1c4   : > { %v557_v5 = vadd.f32 %v1228_v1, %v556_v2  ;;  %v1234_v6 = vpop.eup %1233  ;;  %v692_v1 = vld [vmem:[%s1477_s17 + $0x40] sm:$0xff] }
 0x1c5   : > { %v579_v8 = vpack.c.bf16 %v1234_v6, %v1232_v4  ;;  %v1236_v9 = vpop.eup %1235 }
 0x1c6   : > { %v558_v7 = vadd.f32 %v1230_v3, %v557_v5  ;;  %v578_v12 = vpack.c.bf16 %v1236_v9, %v1230_v3 }
 0x1c7   : > { %617 = vmatpush.bf16.msra.mxu1 %v579_v8 }
 0x1c8   : > { %v559_v10 = vadd.f32 %v1236_v9, %v558_v7  ;;  %v693_v7 = vld [vmem:[%s1477_s17 + $0x48] sm:$0xff] }
 0x1ca   : > { %v560_v11 = vadd.f32 %v1232_v4, %v559_v10 }
 0x1cb   : > { %618 = vmatpush.bf16.msra.mxu1 %v578_v12  ;;  %v686_v12 = vld [vmem:[%s1477_s17 + $0x10] sm:$0xff] }
 0x1cc   : > { %v561_v13 = vadd.f32 %v1234_v6, %v560_v11  ;;  %v685_v6 = vld [vmem:[%s1477_s17 + $0x8] sm:$0xff] }
 0x1ce   : > { %v562_v20 = vrot.slane %v561_v13, 4 }
 0x1cf   : > { %619 = vmatpush.bf16.msra.mxu1 %v577_v14 }
 0x1d0   : > { %v563_v21 = vadd.f32 %v562_v20, %v561_v13  ;;  %v694_v13 = vld [vmem:[%s1477_s17 + $0x50] sm:$0xff] }
 0x1d2   : > { %v564_v22 = vrot.slane %v563_v21, 2 }
 0x1d3   : > { %620 = vmatpush.bf16.msra.mxu1 %v576_v15 }
 0x1d4   : > { %v565_v23 = vadd.f32 %v564_v22, %v563_v21 }
 0x1d6   : > { %1095 = vmatmul.msk.bf16.vlgmr.msra.gmra.mxu1 %vm600_vm1, %v1148_v16  ;;  %v566_v24 = vrot.slane %v565_v23, 1 }
 0x1d8   : > { %v567_v25 = vadd.f32 %v566_v24, %v565_v23  ;;  %v688_v24 = vld [vmem:[%s1477_s17 + $0x20] sm:$0xff] }
 0x1da   : > { %1237 = vrcp.f32 %v567_v25  ;;  %v653_v31 = vand.u32 2147483648, %v567_v25  ;;  %vm647_vm3 = vweird.f32 %v567_v25  ;;  %v651_v32 = vand.u32 2147483647, %v567_v25 }
 0x1dc   : > { %v654_v34 = vor.u32 1.1754944e-38, %v653_v31  ;;  %vm652_vm5 = vcmp.eq.f32.partialorder %v651_v32, 8.507059e+37  ;;  %v697_v31 = vld [vmem:[%s1477_s17 + $0x68] sm:$0xff] }
 0x1e0   : > { %v1238_v26 = vpop.eup %1237 }
 0x1e1   : > { %v643_v27 = vmul.f32 %v1238_v26, %v567_v25  ;;  %vm648_vm2 = vweird.f32 %v1238_v26  ;;  %v696_v25 = vld [vmem:[%s1477_s17 + $0x60] sm:$0xff] }
 0x1e2   : > { %vm649_vm4 = vmor %vm647_vm3, %vm648_vm2 }
 0x1e3   : > { %v644_v28 = vsub.f32 1.0, %v643_v27 }
 0x1e5   : > { %v645_v29 = vmul.f32 %v1238_v26, %v644_v28 }
 0x1e6   : > { %1096 = vmatmul.msk.bf16.gmra.mxu1 %vm600_vm1, %v1149_v17 }
 0x1e7   : > { %v646_v30 = vadd.f32 %v1238_v26, %v645_v29 }
 0x1e9   : > { %v650_v33 = vsel %vm649_vm4, %v1238_v26, %v646_v30  ;;  %v689_v30 = vld [vmem:[%s1477_s17 + $0x28] sm:$0xff] }
 0x1ea   : > { %v655_v36 = vsel %vm652_vm5, %v654_v34, %v650_v33 }
 0x1f6   : > { %1097 = vmatmul.msk.bf16.gmra.mxu1 %vm600_vm1, %v1150_v18  ;;  %v687_v18 = vld [vmem:[%s1477_s17 + $0x18] sm:$0xff] }
 0x206   : > { %1098 = vmatmul.msk.bf16.gmra.mxu1 %vm600_vm1, %v1151_v19  ;;  %v695_v19 = vld [vmem:[%s1477_s17 + $0x58] sm:$0xff] }
 0x253   : > { %v622_v35 = vpop.f32.mrf.mxu1 }
 0x254   : > { %v656_v37 = vmul.f32 %v655_v36, %v622_v35 }
 0x25b   : > { %v624_v38 = vpop.f32.mrf.mxu1 }
 0x25c   : > { %v657_v39 = vmul.f32 %v655_v36, %v624_v38 }
 0x25e   : > { %v680_v40 = vpack.c.bf16 %v657_v39, %v656_v37  ;;  %v698_v37 = vld [vmem:[%s1477_s17 + $0x70] sm:$0xff] }
 0x263   : > { %v627_v41 = vpop.f32.mrf.mxu1 }
 0x264   : > { %v658_v54 = vmul.f32 %v655_v36, %v627_v41 }
 0x26b   : > { %v629_v42 = vpop.f32.mrf.mxu1 }
 0x26c   : > { %v659_v52 = vmul.f32 %v655_v36, %v629_v42  ;;  %v691_v42 = vld [vmem:[%s1477_s17 + $0x38] sm:$0xff] }
 0x26e   : > { %v681_v55 = vpack.c.bf16 %v659_v52, %v658_v54 }
 0x273   : > { %v632_v43 = vpop.f32.mrf.mxu1 }
 0x274   : > { %v660_v51 = vmul.f32 %v655_v36, %v632_v43  ;;  %v699_v43 = vld [vmem:[%s1477_s17 + $0x78] sm:$0xff] }
 0x27b   : > { %v634_v44 = vpop.f32.mrf.mxu1 }
 0x27c   : > { %v661_v49 = vmul.f32 %v655_v36, %v634_v44 }
 0x27e   : > { %v682_v53 = vpack.c.bf16 %v661_v49, %v660_v51 }
 0x283   : > { %v637_v45 = vpop.f32.mrf.mxu1 }
 0x284   : > { %v662_v47 = vmul.f32 %v655_v36, %v637_v45 }
 0x28b   : > { %v639_v46 = vpop.f32.mrf.mxu1 }
 0x28c   : > { %v663_v48 = vmul.f32 %v655_v36, %v639_v46  ;;  %v690_v36 = vld [vmem:[%s1477_s17 + $0x30] sm:$0xff] }
 0x28e   : > { %v683_v50 = vpack.c.bf16 %v663_v48, %v662_v47 }
 0x290   : > { %768 = vmatpush.bf16.msra.mxu2 %v683_v50  ;;  %1160 = vmatpush.bf16.msra.mxu3 %v683_v50 }
 0x294   : > { %769 = vmatpush.bf16.msra.mxu2 %v682_v53  ;;  %1161 = vmatpush.bf16.msra.mxu3 %v682_v53 }
 0x298   : > { %770 = vmatpush.bf16.msra.mxu2 %v681_v55  ;;  %1162 = vmatpush.bf16.msra.mxu3 %v681_v55 }
 0x29c   : > { %771 = vmatpush.bf16.msra.mxu2 %v680_v40  ;;  %1163 = vmatpush.bf16.msra.mxu3 %v680_v40 }
 0x29f   : > { %1131 = vmatmul.msk.bf16.vlgmr.msra.gmra.mxu2 %vm600_vm1, %v1152_v56  ;;  %1135 = vmatmul.msk.bf16.vlgmr.msra.gmra.mxu3 %vm600_vm1, %v1156_v57 }
 0x2af   : > { %1132 = vmatmul.msk.bf16.gmra.mxu2 %vm600_vm1, %v1153_v58  ;;  %1136 = vmatmul.msk.bf16.gmra.mxu3 %vm600_vm1, %v1157_v59 }
 0x2bf   : > { %1133 = vmatmul.msk.bf16.gmra.mxu2 %vm600_vm1, %v1154_v60  ;;  %1137 = vmatmul.msk.bf16.gmra.mxu3 %vm600_vm1, %v1158_v61 }
 0x2cf   : > { %1134 = vmatmul.msk.bf16.gmra.mxu2 %vm600_vm1, %v1155_v62  ;;  %1138 = vmatmul.msk.bf16.gmra.mxu3 %vm600_vm1, %v1159_v63 }
 0x322   : > { %v773_v2 = vpop.f32.mrf.mxu2  ;;  %v793_v3 = vpop.f32.mrf.mxu3 }
 0x323   : > { %v774_v4 = vadd.f32 %v773_v2, %v684_v0  ;;  %v794_v5 = vadd.f32 %v793_v3, %v692_v1 }
 0x325   : > { %813 = vst [vmem:[%s1481_s27] sm:$0xff] %v774_v4 }
 0x326   : > { %821 = vst [vmem:[%s1481_s27 + $0x40] sm:$0xff] %v794_v5 }
 0x32a   : > { %v775_v8 = vpop.f32.mrf.mxu2  ;;  %v795_v9 = vpop.f32.mrf.mxu3 }
 0x32b   : > { %v776_v10 = vadd.f32 %v775_v8, %v685_v6  ;;  %v796_v11 = vadd.f32 %v795_v9, %v693_v7 }
 0x32c   : > { %v898_v48 = vld [vmem:[%s1481_s27] sm:$0xff] (%p1377_p6) }
 0x32d   : > { %814 = vst [vmem:[%s1481_s27 + $0x8] sm:$0xff] %v776_v10  ;;  %v914_v56 = vld [vmem:[%s1481_s27 + $0x40] sm:$0xff] (%p1377_p6) }
 0x32e   : > { %822 = vst [vmem:[%s1481_s27 + $0x48] sm:$0xff] %v796_v11 }
 0x32f   : > { %899 = vst [vmem:[%s839_s30] sm:$0xff] (%p1377_p6), %v898_v48 }
 0x330   : > { %915 = vst [vmem:[%s839_s30 + $0x80] sm:$0xff] (%p1377_p6), %v914_v56 }
 0x332   : > { %v778_v14 = vpop.f32.mrf.mxu2  ;;  %v798_v15 = vpop.f32.mrf.mxu3 }
 0x333   : > { %v779_v16 = vadd.f32 %v778_v14, %v686_v12  ;;  %v799_v17 = vadd.f32 %v798_v15, %v694_v13 }
 0x334   : > { %v900_v49 = vld [vmem:[%s1481_s27 + $0x8] sm:$0xff] (%p1377_p6) }
 0x335   : > { %815 = vst [vmem:[%s1481_s27 + $0x10] sm:$0xff] %v779_v16  ;;  %v916_v57 = vld [vmem:[%s1481_s27 + $0x48] sm:$0xff] (%p1377_p6) }
 0x336   : > { %823 = vst [vmem:[%s1481_s27 + $0x50] sm:$0xff] %v799_v17 }
 0x337   : > { %901 = vst [vmem:[%s839_s30 + $0x10] sm:$0xff] (%p1377_p6), %v900_v49 }
 0x338   : > { %917 = vst [vmem:[%s839_s30 + $0x90] sm:$0xff] (%p1377_p6), %v916_v57 }
 0x33a   : > { %v780_v20 = vpop.f32.mrf.mxu2  ;;  %v800_v21 = vpop.f32.mrf.mxu3 }
 0x33b   : > { %v781_v22 = vadd.f32 %v780_v20, %v687_v18  ;;  %v801_v23 = vadd.f32 %v800_v21, %v695_v19 }
 0x33c   : > { %v902_v50 = vld [vmem:[%s1481_s27 + $0x10] sm:$0xff] (%p1377_p6) }
 0x33d   : > { %816 = vst [vmem:[%s1481_s27 + $0x18] sm:$0xff] %v781_v22  ;;  %v918_v58 = vld [vmem:[%s1481_s27 + $0x50] sm:$0xff] (%p1377_p6) }
 0x33e   : > { %824 = vst [vmem:[%s1481_s27 + $0x58] sm:$0xff] %v801_v23 }
 0x33f   : > { %903 = vst [vmem:[%s839_s30 + $0x20] sm:$0xff] (%p1377_p6), %v902_v50 }
 0x340   : > { %919 = vst [vmem:[%s839_s30 + $0xa0] sm:$0xff] (%p1377_p6), %v918_v58 }
 0x342   : > { %v783_v26 = vpop.f32.mrf.mxu2  ;;  %v803_v27 = vpop.f32.mrf.mxu3 }
 0x343   : > { %v784_v28 = vadd.f32 %v783_v26, %v688_v24  ;;  %v804_v29 = vadd.f32 %v803_v27, %v696_v25 }
 0x344   : > { %v904_v51 = vld [vmem:[%s1481_s27 + $0x18] sm:$0xff] (%p1377_p6) }
 0x345   : > { %817 = vst [vmem:[%s1481_s27 + $0x20] sm:$0xff] %v784_v28  ;;  %v920_v59 = vld [vmem:[%s1481_s27 + $0x58] sm:$0xff] (%p1377_p6) }
 0x346   : > { %825 = vst [vmem:[%s1481_s27 + $0x60] sm:$0xff] %v804_v29 }
 0x347   : > { %905 = vst [vmem:[%s839_s30 + $0x30] sm:$0xff] (%p1377_p6), %v904_v51 }
 0x348   : > { %921 = vst [vmem:[%s839_s30 + $0xb0] sm:$0xff] (%p1377_p6), %v920_v59 }
 0x34a   : > { %v785_v32 = vpop.f32.mrf.mxu2  ;;  %v805_v33 = vpop.f32.mrf.mxu3 }
 0x34b   : > { %v786_v34 = vadd.f32 %v785_v32, %v689_v30  ;;  %v806_v35 = vadd.f32 %v805_v33, %v697_v31 }
 0x34c   : > { %v906_v52 = vld [vmem:[%s1481_s27 + $0x20] sm:$0xff] (%p1377_p6) }
 0x34d   : > { %818 = vst [vmem:[%s1481_s27 + $0x28] sm:$0xff] %v786_v34  ;;  %v922_v60 = vld [vmem:[%s1481_s27 + $0x60] sm:$0xff] (%p1377_p6) }
 0x34e   : > { %826 = vst [vmem:[%s1481_s27 + $0x68] sm:$0xff] %v806_v35 }
 0x34f   : > { %907 = vst [vmem:[%s839_s30 + $0x40] sm:$0xff] (%p1377_p6), %v906_v52 }
 0x350   : > { %923 = vst [vmem:[%s839_s30 + $0xc0] sm:$0xff] (%p1377_p6), %v922_v60 }
 0x352   : > { %v788_v38 = vpop.f32.mrf.mxu2  ;;  %v808_v39 = vpop.f32.mrf.mxu3 }
 0x353   : > { %v789_v40 = vadd.f32 %v788_v38, %v690_v36  ;;  %v809_v41 = vadd.f32 %v808_v39, %v698_v37 }
 0x354   : > { %v908_v53 = vld [vmem:[%s1481_s27 + $0x28] sm:$0xff] (%p1377_p6) }
 0x355   : > { %819 = vst [vmem:[%s1481_s27 + $0x30] sm:$0xff] %v789_v40  ;;  %v924_v61 = vld [vmem:[%s1481_s27 + $0x68] sm:$0xff] (%p1377_p6) }
 0x356   : > { %827 = vst [vmem:[%s1481_s27 + $0x70] sm:$0xff] %v809_v41 }
 0x357   : > { %909 = vst [vmem:[%s839_s30 + $0x50] sm:$0xff] (%p1377_p6), %v908_v53 }
 0x358   : > { %925 = vst [vmem:[%s839_s30 + $0xd0] sm:$0xff] (%p1377_p6), %v924_v61 }
 0x35a   : > { %v790_v44 = vpop.f32.mrf.mxu2  ;;  %v810_v45 = vpop.f32.mrf.mxu3  ;;  %835 = sbr.rel (!%p1377_p6) target bundleno = 871 (0x367), region = 123 }
 0x35b   : > { %v791_v46 = vadd.f32 %v790_v44, %v691_v42  ;;  %v811_v47 = vadd.f32 %v810_v45, %v699_v43 }
 0x35c   : > { %v910_v54 = vld [vmem:[%s1481_s27 + $0x30] sm:$0xff] (%p1377_p6) }
 0x35d   : > { %820 = vst [vmem:[%s1481_s27 + $0x38] sm:$0xff] %v791_v46  ;;  %v926_v62 = vld [vmem:[%s1481_s27 + $0x70] sm:$0xff] (%p1377_p6) }
 0x35e   : > { %828 = vst [vmem:[%s1481_s27 + $0x78] sm:$0xff] %v811_v47 }
 0x35f   : > { %911 = vst [vmem:[%s839_s30 + $0x60] sm:$0xff] %v910_v54 }
 0x360   : > { %927 = vst [vmem:[%s839_s30 + $0xe0] sm:$0xff] %v926_v62 }
 0x364   : > { %v912_v55 = vld [vmem:[%s1481_s27 + $0x38] sm:$0xff] }
 0x365   : > { %913 = vst [vmem:[%s839_s30 + $0x70] sm:$0xff] %v912_v55  ;;  %v928_v63 = vld [vmem:[%s1481_s27 + $0x78] sm:$0xff] }
 0x366   : > { %929 = vst [vmem:[%s839_s30 + $0xf0] sm:$0xff] %v928_v63 }
 0x367 PF: > { %s15_s24 = sadd.s32 1, %s1293_s24   ;;  %s1565_s18 = smov %s1273_s19 }
 0x368   : > { %p12_p13 = scmp.ge.s32.totalorder %s15_s24, 6   ;;  %s1566_s19 = smov %s1385_s9 }
 0x369   : > { %s1567_s20 = smov %s1285_s22  ;;  %s1568_s21 = smov %s1289_s23 }
 0x36a   : > { %s1569_s22 = smov %s1572_s25  ;;  %s1570_s23 = smov %s1576_s26 }
 0x36b   :  { %14 = sbr.rel (!%p12_p13) target bundleno = 4 (0x4), region = 206 }

</bundles_post_ra>
